<compile_context>
chip_gen: v7x
topology: tpu7x:2x2x1
jax: 0.10.0
libtpu: 0.0.40
codegen_flags: <defaults>
</compile_context>

<pallas_src>
import functools

import jax
import jax.numpy as jnp
from jax.experimental import pallas as pl
from jax.experimental.pallas import tpu as pltpu

_LANE = 128
_TARGET_TILE_ROWS = 1024            # larger tiles -> fewer grid steps (v6e/v7x win)
_MIN_BYTES_FOR_PALLAS = 1 << 20     # below ~1 MiB, XLA's fused concat wins


def _concat_rows_kernel(hidden_sizes, *refs):
    """refs = (*in_refs, out_ref).

    in_refs[i] has shape (T, hidden_sizes[i]); out_ref has shape
    (T, sum(hidden_sizes)).  Every running offset is a multiple of 128, so all
    stores except possibly the final ragged tail lower to full unmasked vst.
    """
    n_in = len(hidden_sizes)
    in_refs = refs[:n_in]
    out_ref = refs[n_in]
    offset = 0
    for i, h in enumerate(hidden_sizes):
        out_ref[:, offset:offset + h] = in_refs[i][...]
        offset += h


def _vmem_limit_bytes():
    """Scoped-VMEM limit that is safe on every TPU generation.

    v7x has only 64 MiB of VMEM per TensorCore (and the capacity query may
    report a per-chip, 2-TC figure), so cap at 48 MiB; v5e/v6e (128 MiB) have
    plenty of headroom and a memory-bound copy gains nothing from more.
    """
    try:
        cap = int(pltpu.get_tpu_info().vmem_capacity_bytes)
    except Exception:
        cap = 64 * 1024 * 1024
    return min(cap * 3 // 4, 48 * 1024 * 1024)


def concat3d_pallas(tensors):
    """Concatenate a list of [B, S, H_i] tensors along the last dim on TPU."""
    assert len(tensors) >= 1
    B, S = int(tensors[0].shape[0]), int(tensors[0].shape[1])
    dtype = tensors[0].dtype
    for t in tensors:
        assert t.ndim == 3 and t.shape[0] == B and t.shape[1] == S, \
            "batch/seq must match"
        assert t.dtype == dtype, "dtypes must match"
    hidden_sizes = tuple(int(t.shape[2]) for t in tensors)
    H_out = sum(hidden_sizes)

    dtype_bytes = jnp.dtype(dtype).itemsize
    rows = B * S
    io_bytes = 2 * rows * H_out * dtype_bytes  # read every input + write output

    # ---- VMEM budget & row-tile sizing --------------------------------------
    vmem_limit = _vmem_limit_bytes()
    tile_budget = vmem_limit - 4 * 1024 * 1024        # headroom for scratch
    bytes_per_row = 2 * H_out * dtype_bytes           # inputs(sum=H_out)+output
    row_align = 8 * max(1, 4 // max(1, dtype_bytes))  # 8 f32 / 16 bf16 / 32 i8
    max_rows = tile_budget // (2 * bytes_per_row)     # x2 for double buffering

    # Pallas path only when every *running* lane offset is 128-aligned (i.e.
    # only the last input may be ragged): all stores except at most the final
    # lane block are unmasked lane-dense vst.
    offset, lane_ok = 0, True
    for h in hidden_sizes[:-1]:
        offset += h
        lane_ok &= (offset % _LANE == 0)

    if (io_bytes < _MIN_BYTES_FOR_PALLAS or not lane_ok
            or max_rows < row_align or rows < 2 * row_align):
        # Tiny inputs, 128-unaligned lane offsets, or a single aligned row tile
        # that cannot fit VMEM: let XLA concat (it can fuse into the consumer;
        # a Pallas copy cannot beat that).
        return jnp.concatenate(tensors, axis=2)

    tile_rows = min(_TARGET_TILE_ROWS, max_rows)
    tile_rows = max(row_align, (tile_rows // row_align) * row_align)
    rows_ceil = -(-rows // row_align) * row_align
    tile_rows = min(tile_rows, rows_ceil)
    if tile_rows >= rows:
        # Guarantee >= 2 grid steps so v7x's two TensorCores both move data
        # (harmless on single-TC v5e/v6e).
        half = -(-((rows + 1) // 2) // row_align) * row_align
        tile_rows = max(row_align, min(tile_rows, half))

    grid = pl.cdiv(rows, tile_rows)
    flats = [t.reshape(rows, h) for t, h in zip(tensors, hidden_sizes)]

    kernel = functools.partial(_concat_rows_kernel, hidden_sizes)
    in_specs = [pl.BlockSpec((tile_rows, h), lambda i: (i, 0)) for h in hidden_sizes]
    out_spec = pl.BlockSpec((tile_rows, H_out), lambda i: (i, 0))

    out_flat = pl.pallas_call(
        kernel,
        out_shape=jax.ShapeDtypeStruct((rows, H_out), dtype),
        grid_spec=pltpu.PrefetchScalarGridSpec(
            num_scalar_prefetch=0,
            grid=(grid,),
            in_specs=in_specs,
            out_specs=out_spec,
        ),
        compiler_params=pltpu.CompilerParams(
            dimension_semantics=("parallel",),
            vmem_limit_bytes=int(vmem_limit),
        ),
        cost_estimate=pl.CostEstimate(
            flops=0, transcendentals=0, bytes_accessed=int(io_bytes)),
    )(*flats)

    return out_flat.reshape(B, S, H_out)


class Concat3D:
    """JAX/Pallas port of the Concat3D brick.

    forward(*args): args alternate (tensor, length, tensor, length, ...).
    Returns (concat_along_last_dim, first_length).
    """

    def __init__(self, layer_conf=None):
        # No parameters — pure concatenation brick.
        self.layer_conf = layer_conf

    def forward(self, *args):
        tensors = [a for i, a in enumerate(args) if i % 2 == 0]
        lengths = [a for i, a in enumerate(args) if i % 2 == 1]
        out = concat3d_pallas(tensors)
        return out, lengths[0]

    __call__ = forward


if __name__ == "__main__":
    key = jax.random.PRNGKey(0)
    keys = jax.random.split(key, 9)

    brick = Concat3D(layer_conf=None)

    # --- case 1: aligned offsets, ragged last hidden, rows NOT divisible by ---
    # --- the tile -> exercises the cdiv-grid boundary masking in Pallas     ---
    B, S = 2, 1000
    H1, H2, H3 = 128, 256, 160          # offsets 0, 128, 384 (aligned); tail ragged
    x = jax.random.normal(keys[0], (B, S, H1), dtype=jnp.float32)
    y = jax.random.normal(keys[1], (B, S, H2), dtype=jnp.float32)
    z = jax.random.normal(keys[2], (B, S, H3), dtype=jnp.float32)
    x_len = jnp.full((B,), S, dtype=jnp.int32)

    out, out_len = brick(x, x_len, y, x_len, z, x_len)
    out = jax.block_until_ready(out)
    ref = jnp.concatenate([x, y, z], axis=2)
    assert out.shape == (B, S, H1 + H2 + H3), out.shape
    assert jnp.array_equal(out, ref), "mismatch (pallas, ragged-tail path)"
    assert jnp.array_equal(out_len, x_len)

    # --- case 2: fully 128-aligned hidden sizes -> unmasked-store fast path ---
    B2, S2 = 2, 512
    a = jax.random.normal(keys[3], (B2, S2, 128), dtype=jnp.float32)
    b = jax.random.normal(keys[4], (B2, S2, 256), dtype=jnp.float32)
    c = jax.random.normal(keys[5], (B2, S2, 128), dtype=jnp.float32)
    a_len = jnp.full((B2,), S2, dtype=jnp.int32)
    out2, out2_len = brick(a, a_len, b, a_len, c, a_len)
    out2 = jax.block_until_ready(out2)
    assert jnp.array_equal(out2, jnp.concatenate([a, b, c], axis=2)), \
        "mismatch (pallas, aligned path)"
    assert jnp.array_equal(out2_len, a_len)

    # --- case 3: tiny / 128-unaligned offsets -> XLA-concat fallback ---------
    p = jax.random.normal(keys[6], (2, 8, 32), dtype=jnp.float32)
    q = jax.random.normal(keys[7], (2, 8, 48), dtype=jnp.float32)
    r = jax.random.normal(keys[8], (2, 8, 16), dtype=jnp.float32)
    p_len = jnp.full((2,), 8, dtype=jnp.int32)
    out3, out3_len = brick(p, p_len, q, p_len, r, p_len)
    out3 = jax.block_until_ready(out3)
    assert jnp.array_equal(out3, jnp.concatenate([p, q, r], axis=2)), \
        "mismatch (fallback path)"
    assert jnp.array_equal(out3_len, p_len)

    print("KERNEL_OK")
</pallas_src>

<mosaic_0001>
module attributes {stable_mosaic.version = 11 : i64} {
  func.func @_concat_rows_kernel(%arg0: i32, %arg1: memref<1024x128xf32, #tpu.memory_space<vmem>>, %arg2: memref<1024x256xf32, #tpu.memory_space<vmem>>, %arg3: memref<1024x160xf32, #tpu.memory_space<vmem>>, %arg4: memref<1024x544xf32, #tpu.memory_space<vmem>>) attributes {dimension_semantics = [#tpu.dimension_semantics<parallel>], iteration_bounds = array<i64: 2>, scalar_prefetch = 0 : i64, scratch_operands = 0 : i64, tpu.core_type = #tpu.core_type<tc>, window_params = [{transform_indices = @transform_0, window_bounds = array<i64: 1024, 128>}, {transform_indices = @transform_1, window_bounds = array<i64: 1024, 256>}, {transform_indices = @transform_2, window_bounds = array<i64: 1024, 160>}, {transform_indices = @transform_3, window_bounds = array<i64: 1024, 544>}]} {
    %c0 = arith.constant 0 : index
    %c0_0 = arith.constant 0 : index
    %0 = vector.load %arg1[%c0, %c0_0] : memref<1024x128xf32, #tpu.memory_space<vmem>>, vector<1024x128xf32>
    %c0_1 = arith.constant 0 : index
    %c0_2 = arith.constant 0 : index
    %1 = vector.load %arg4[%c0_1, %c0_2] : memref<1024x544xf32, #tpu.memory_space<vmem>>, vector<1024x128xf32>
    tpu.vector_store %arg4[%c0_1, %c0_2], %0 {strides = array<i32>} : memref<1024x544xf32, #tpu.memory_space<vmem>>, vector<1024x128xf32>,
    %c0_3 = arith.constant 0 : index
    %c0_4 = arith.constant 0 : index
    %2 = vector.load %arg2[%c0_3, %c0_4] : memref<1024x256xf32, #tpu.memory_space<vmem>>, vector<1024x256xf32>
    %c0_5 = arith.constant 0 : index
    %c128 = arith.constant 128 : index
    %3 = vector.load %arg4[%c0_5, %c128] : memref<1024x544xf32, #tpu.memory_space<vmem>>, vector<1024x256xf32>
    tpu.vector_store %arg4[%c0_5, %c128], %2 {strides = array<i32>} : memref<1024x544xf32, #tpu.memory_space<vmem>>, vector<1024x256xf32>,
    %c0_6 = arith.constant 0 : index
    %c0_7 = arith.constant 0 : index
    %4 = vector.load %arg3[%c0_6, %c0_7] : memref<1024x160xf32, #tpu.memory_space<vmem>>, vector<1024x160xf32>
    %c0_8 = arith.constant 0 : index
    %c384 = arith.constant 384 : index
    %5 = vector.load %arg4[%c0_8, %c384] : memref<1024x544xf32, #tpu.memory_space<vmem>>, vector<1024x160xf32>
    tpu.vector_store %arg4[%c0_8, %c384], %4 {strides = array<i32>} : memref<1024x544xf32, #tpu.memory_space<vmem>>, vector<1024x160xf32>,
    return
  }
  func.func @transform_0(%arg0: i32) -> (i32, i32) {
    %c0_i32 = arith.constant 0 : i32
    %c0_i32_0 = arith.constant 0 : i32
    return %arg0, %c0_i32 : i32, i32
  }
  func.func @transform_1(%arg0: i32) -> (i32, i32) {
    %c0_i32 = arith.constant 0 : i32
    %c0_i32_0 = arith.constant 0 : i32
    return %arg0, %c0_i32 : i32, i32
  }
  func.func @transform_2(%arg0: i32) -> (i32, i32) {
    %c0_i32 = arith.constant 0 : i32
    %c0_i32_0 = arith.constant 0 : i32
    return %arg0, %c0_i32 : i32, i32
  }
  func.func @transform_3(%arg0: i32) -> (i32, i32) {
    %c0_i32 = arith.constant 0 : i32
    %c0_i32_0 = arith.constant 0 : i32
    return %arg0, %c0_i32 : i32, i32
  }
}

</mosaic_0001>

<bundles_post_ra>
// kernel: tpu_custom_call.1
= control target key start
LH: loop header
LB: loop body
LE: loop exit
PB: predicated region body
PF: predicated region fallthrough
CT: control target
= control target key end

     0   :  { %s2121_s12 = smov 0   ;;  %s2123_s13 = smov 0   ;;  %s3816_s0 = inlined_call_operand.vmem [shape: f32[2000,128], index: 0, kind: input, shape index: {}]   ;;  %s3817_s1 = inlined_call_operand.vmem [shape: f32[2000,256], index: 1, kind: input, shape index: {}]   ;;  %s3818_s2 = inlined_call_operand.vmem [shape: f32[2000,160], index: 2, kind: input, shape index: {}]   ;;  %s3819_s3 = inlined_call_operand.vmem [shape: f32[2000,544], index: 3, kind: output, shape index: {}]  }
   0x1   :  { %s2125_s14 = smov 0  }
   0x2 LB: > { %s2132_s15 = sadd.s32 4294967295, %s2067_s14   ;;  %s2134_s16 = sadd.s32 1, %s2067_s14   ;;  %s2067_s14 = sphi %s2125_s14, %s3831_s14   ;;  %s2063_s13 = sphi %s2123_s13, %s3830_s13   ;;  %s2059_s12 = sphi %s2121_s12, %s3829_s12  }
   0x3   : > { %s95_s17 = ssub.s32 %s2067_s14, %s2134_s16  ;;  %s98_s18 = sadd.s32 1, %s2063_s13 }
   0x4   : > { %p96_p0 = scmp.eq.s32.totalorder %s95_s17, 0  ;;  %p108_p1 = scmp.ne.s32.totalorder %s2063_s13, %s2059_s12 }
   0x5   : > { %p109_p2 = scmp.eq.s32.totalorder %s2132_s15, 1  ;;  %p1894_p3 = scmp.ge.s32.totalorder %s2067_s14, 1 }
   0x6   : > { %s2141_s19 = scalar_select %p96_p0, %s2063_s13, %s98_s18  }
   0x7   : > { %p2143_p4 = por %p109_p2, %p108_p1  ;;  %p190_p5 = scmp.lt.s32.totalorder %s2067_s14, 3 }
   0x9   : > { %p191_p6 = pnand %p1894_p3, %p190_p5 }
   0xa   : > { %s236_s21 = sand.u32 (!%p191_p6), 1, %s2059_s12   ;;  %s2148_s22 = sshll.u32 (!%p191_p6), %s2132_s15, 7  ;;  %vm1318_vm0 = vcmask (!%p191_p6), 261120  }
   0xb   : > { %194 = sbr.rel (%p191_p6) target bundleno = 429 (0x1ad), region = 32  ;;  %p244_p7 = scmp.lt.s32.totalorder (!%p191_p6), %s2148_s22, 249 }
   0xc   : > { %s1918_s23 = smul.u32 (!%p191_p6), 5120, %s236_s21 }
   0xe   : > { %s2163_s29 = scalar_lea.vmem (!%p191_p6), [#allocation2], %s1918_s23  }
  0x12   : > { %s2152_s24 = scalar_select %p244_p7, %s2148_s22, 249 }
  0x13   : > { %s1582_s10 = ssub.s32 (%p2143_p4), 250, %s2148_s22  ;;  %s1919_s11 = smul.u32 (%p2143_p4), 5120, %s2132_s15 }
  0x14   : > { %s1896_s25 = sshll.u32 %s2152_s24, 3  ;;  %s1916_s30 = sshll.u32 %s2152_s24, 4 }
  0x15   : > { %s2158_s28 = scalar_lea.vmem %s3816_s0, %s1896_s25  ;;  %s2399_s6 = scalar_lea.vmem %s3817_s1, %s1916_s30 }
  0x16   : > { %v293_v0 = vld [vmem:[%s2158_s28] sm:$0xff]  ;;  %v294_v1 = vld [vmem:[%s2158_s28 + $0x8] sm:$0xff]  ;;  %v295_v2 = vld [vmem:[%s2158_s28 + $0x10] sm:$0xff]  ;;  %s2922_s9 = scalar_lea.vmem %s3818_s2, %s1916_s30  ;;  %p1583_p8 = scmp.lt.s32.totalorder (%p2143_p4), %s1582_s10, 128 }
  0x17   : > { %421 = vst [vmem:[%s2163_s29] sm:$0xff] %v293_v0  ;;  %422 = vst [vmem:[%s2163_s29 + $0x28] sm:$0xff] %v294_v1  ;;  %v296_v3 = vld [vmem:[%s2158_s28 + $0x18] sm:$0xff]  ;;  %v297_v4 = vld [vmem:[%s2158_s28 + $0x20] sm:$0xff]  ;;  %s3592_s17 = scalar_lea.vmem (%p2143_p4), %s3819_s3, %s1919_s11  }
  0x18   : > { %423 = vst [vmem:[%s2163_s29 + $0x50] sm:$0xff] %v295_v2  ;;  %v298_v5 = vld [vmem:[%s2158_s28 + $0x28] sm:$0xff]  ;;  %424 = vst [vmem:[%s2163_s29 + $0x78] sm:$0xff] %v296_v3  ;;  %v299_v6 = vld [vmem:[%s2158_s28 + $0x30] sm:$0xff] }
  0x19   : > { %425 = vst [vmem:[%s2163_s29 + $0xa0] sm:$0xff] %v297_v4  ;;  %426 = vst [vmem:[%s2163_s29 + $0xc8] sm:$0xff] %v298_v5  ;;  %v300_v7 = vld [vmem:[%s2158_s28 + $0x38] sm:$0xff]  ;;  %v301_v8 = vld [vmem:[%s2158_s28 + $0x40] sm:$0xff] }
  0x1a   : > { %427 = vst [vmem:[%s2163_s29 + $0xf0] sm:$0xff] %v299_v6  ;;  %428 = vst [vmem:[%s2163_s29 + $0x118] sm:$0xff] %v300_v7  ;;  %v302_v9 = vld [vmem:[%s2158_s28 + $0x48] sm:$0xff]  ;;  %v303_v10 = vld [vmem:[%s2158_s28 + $0x50] sm:$0xff] }
  0x1b   : > { %429 = vst [vmem:[%s2163_s29 + $0x140] sm:$0xff] %v301_v8  ;;  %v304_v11 = vld [vmem:[%s2158_s28 + $0x58] sm:$0xff]  ;;  %430 = vst [vmem:[%s2163_s29 + $0x168] sm:$0xff] %v302_v9  ;;  %v305_v12 = vld [vmem:[%s2158_s28 + $0x60] sm:$0xff] }
  0x1c   : > { %431 = vst [vmem:[%s2163_s29 + $0x190] sm:$0xff] %v303_v10  ;;  %432 = vst [vmem:[%s2163_s29 + $0x1b8] sm:$0xff] %v304_v11  ;;  %v306_v13 = vld [vmem:[%s2158_s28 + $0x68] sm:$0xff]  ;;  %v307_v14 = vld [vmem:[%s2158_s28 + $0x70] sm:$0xff] }
  0x1d   : > { %433 = vst [vmem:[%s2163_s29 + $0x1e0] sm:$0xff] %v305_v12  ;;  %434 = vst [vmem:[%s2163_s29 + $0x208] sm:$0xff] %v306_v13  ;;  %v308_v15 = vld [vmem:[%s2158_s28 + $0x78] sm:$0xff]  ;;  %v309_v16 = vld [vmem:[%s2158_s28 + $0x80] sm:$0xff] }
  0x1e   : > { %435 = vst [vmem:[%s2163_s29 + $0x230] sm:$0xff] %v307_v14  ;;  %v310_v17 = vld [vmem:[%s2158_s28 + $0x88] sm:$0xff]  ;;  %436 = vst [vmem:[%s2163_s29 + $0x258] sm:$0xff] %v308_v15  ;;  %v311_v18 = vld [vmem:[%s2158_s28 + $0x90] sm:$0xff] }
  0x1f   : > { %437 = vst [vmem:[%s2163_s29 + $0x280] sm:$0xff] %v309_v16  ;;  %438 = vst [vmem:[%s2163_s29 + $0x2a8] sm:$0xff] %v310_v17  ;;  %v312_v19 = vld [vmem:[%s2158_s28 + $0x98] sm:$0xff]  ;;  %v313_v20 = vld [vmem:[%s2158_s28 + $0xa0] sm:$0xff] }
  0x20   : > { %439 = vst [vmem:[%s2163_s29 + $0x2d0] sm:$0xff] %v311_v18  ;;  %440 = vst [vmem:[%s2163_s29 + $0x2f8] sm:$0xff] %v312_v19  ;;  %v314_v21 = vld [vmem:[%s2158_s28 + $0xa8] sm:$0xff]  ;;  %v315_v22 = vld [vmem:[%s2158_s28 + $0xb0] sm:$0xff] }
  0x21   : > { %441 = vst [vmem:[%s2163_s29 + $0x320] sm:$0xff] %v313_v20  ;;  %v316_v23 = vld [vmem:[%s2158_s28 + $0xb8] sm:$0xff]  ;;  %442 = vst [vmem:[%s2163_s29 + $0x348] sm:$0xff] %v314_v21  ;;  %v317_v24 = vld [vmem:[%s2158_s28 + $0xc0] sm:$0xff] }
  0x22   : > { %443 = vst [vmem:[%s2163_s29 + $0x370] sm:$0xff] %v315_v22  ;;  %444 = vst [vmem:[%s2163_s29 + $0x398] sm:$0xff] %v316_v23  ;;  %v318_v25 = vld [vmem:[%s2158_s28 + $0xc8] sm:$0xff]  ;;  %v319_v26 = vld [vmem:[%s2158_s28 + $0xd0] sm:$0xff] }
  0x23   : > { %445 = vst [vmem:[%s2163_s29 + $0x3c0] sm:$0xff] %v317_v24  ;;  %446 = vst [vmem:[%s2163_s29 + $0x3e8] sm:$0xff] %v318_v25  ;;  %v320_v27 = vld [vmem:[%s2158_s28 + $0xd8] sm:$0xff]  ;;  %v321_v28 = vld [vmem:[%s2158_s28 + $0xe0] sm:$0xff] }
  0x24   : > { %447 = vst [vmem:[%s2163_s29 + $0x410] sm:$0xff] %v319_v26  ;;  %v322_v29 = vld [vmem:[%s2158_s28 + $0xe8] sm:$0xff]  ;;  %448 = vst [vmem:[%s2163_s29 + $0x438] sm:$0xff] %v320_v27  ;;  %v323_v30 = vld [vmem:[%s2158_s28 + $0xf0] sm:$0xff] }
  0x25   : > { %449 = vst [vmem:[%s2163_s29 + $0x460] sm:$0xff] %v321_v28  ;;  %450 = vst [vmem:[%s2163_s29 + $0x488] sm:$0xff] %v322_v29  ;;  %v324_v31 = vld [vmem:[%s2158_s28 + $0xf8] sm:$0xff]  ;;  %v325_v32 = vld [vmem:[%s2158_s28 + $0x100] sm:$0xff] }
  0x26   : > { %451 = vst [vmem:[%s2163_s29 + $0x4b0] sm:$0xff] %v323_v30  ;;  %452 = vst [vmem:[%s2163_s29 + $0x4d8] sm:$0xff] %v324_v31  ;;  %v326_v33 = vld [vmem:[%s2158_s28 + $0x108] sm:$0xff]  ;;  %v327_v34 = vld [vmem:[%s2158_s28 + $0x110] sm:$0xff] }
  0x27   : > { %453 = vst [vmem:[%s2163_s29 + $0x500] sm:$0xff] %v325_v32  ;;  %v328_v35 = vld [vmem:[%s2158_s28 + $0x118] sm:$0xff]  ;;  %454 = vst [vmem:[%s2163_s29 + $0x528] sm:$0xff] %v326_v33  ;;  %v329_v36 = vld [vmem:[%s2158_s28 + $0x120] sm:$0xff] }
  0x28   : > { %455 = vst [vmem:[%s2163_s29 + $0x550] sm:$0xff] %v327_v34  ;;  %456 = vst [vmem:[%s2163_s29 + $0x578] sm:$0xff] %v328_v35  ;;  %v330_v37 = vld [vmem:[%s2158_s28 + $0x128] sm:$0xff]  ;;  %v331_v38 = vld [vmem:[%s2158_s28 + $0x130] sm:$0xff] }
  0x29   : > { %457 = vst [vmem:[%s2163_s29 + $0x5a0] sm:$0xff] %v329_v36  ;;  %458 = vst [vmem:[%s2163_s29 + $0x5c8] sm:$0xff] %v330_v37  ;;  %v332_v39 = vld [vmem:[%s2158_s28 + $0x138] sm:$0xff]  ;;  %v333_v40 = vld [vmem:[%s2158_s28 + $0x140] sm:$0xff] }
  0x2a   : > { %459 = vst [vmem:[%s2163_s29 + $0x5f0] sm:$0xff] %v331_v38  ;;  %v334_v41 = vld [vmem:[%s2158_s28 + $0x148] sm:$0xff]  ;;  %460 = vst [vmem:[%s2163_s29 + $0x618] sm:$0xff] %v332_v39  ;;  %v335_v42 = vld [vmem:[%s2158_s28 + $0x150] sm:$0xff] }
  0x2b   : > { %461 = vst [vmem:[%s2163_s29 + $0x640] sm:$0xff] %v333_v40  ;;  %462 = vst [vmem:[%s2163_s29 + $0x668] sm:$0xff] %v334_v41  ;;  %v336_v43 = vld [vmem:[%s2158_s28 + $0x158] sm:$0xff]  ;;  %v337_v44 = vld [vmem:[%s2158_s28 + $0x160] sm:$0xff] }
  0x2c   : > { %463 = vst [vmem:[%s2163_s29 + $0x690] sm:$0xff] %v335_v42  ;;  %464 = vst [vmem:[%s2163_s29 + $0x6b8] sm:$0xff] %v336_v43  ;;  %v338_v45 = vld [vmem:[%s2158_s28 + $0x168] sm:$0xff]  ;;  %v339_v46 = vld [vmem:[%s2158_s28 + $0x170] sm:$0xff] }
  0x2d   : > { %465 = vst [vmem:[%s2163_s29 + $0x6e0] sm:$0xff] %v337_v44  ;;  %v340_v47 = vld [vmem:[%s2158_s28 + $0x178] sm:$0xff]  ;;  %466 = vst [vmem:[%s2163_s29 + $0x708] sm:$0xff] %v338_v45  ;;  %v341_v48 = vld [vmem:[%s2158_s28 + $0x180] sm:$0xff] }
  0x2e   : > { %467 = vst [vmem:[%s2163_s29 + $0x730] sm:$0xff] %v339_v46  ;;  %468 = vst [vmem:[%s2163_s29 + $0x758] sm:$0xff] %v340_v47  ;;  %v342_v49 = vld [vmem:[%s2158_s28 + $0x188] sm:$0xff]  ;;  %v343_v50 = vld [vmem:[%s2158_s28 + $0x190] sm:$0xff] }
  0x2f   : > { %469 = vst [vmem:[%s2163_s29 + $0x780] sm:$0xff] %v341_v48  ;;  %470 = vst [vmem:[%s2163_s29 + $0x7a8] sm:$0xff] %v342_v49  ;;  %v344_v51 = vld [vmem:[%s2158_s28 + $0x198] sm:$0xff]  ;;  %v345_v52 = vld [vmem:[%s2158_s28 + $0x1a0] sm:$0xff] }
  0x30   : > { %471 = vst [vmem:[%s2163_s29 + $0x7d0] sm:$0xff] %v343_v50  ;;  %v346_v53 = vld [vmem:[%s2158_s28 + $0x1a8] sm:$0xff]  ;;  %472 = vst [vmem:[%s2163_s29 + $0x7f8] sm:$0xff] %v344_v51  ;;  %v347_v54 = vld [vmem:[%s2158_s28 + $0x1b0] sm:$0xff] }
  0x31   : > { %473 = vst [vmem:[%s2163_s29 + $0x820] sm:$0xff] %v345_v52  ;;  %474 = vst [vmem:[%s2163_s29 + $0x848] sm:$0xff] %v346_v53  ;;  %v348_v55 = vld [vmem:[%s2158_s28 + $0x1b8] sm:$0xff]  ;;  %v349_v56 = vld [vmem:[%s2158_s28 + $0x1c0] sm:$0xff] }
  0x32   : > { %475 = vst [vmem:[%s2163_s29 + $0x870] sm:$0xff] %v347_v54  ;;  %476 = vst [vmem:[%s2163_s29 + $0x898] sm:$0xff] %v348_v55  ;;  %v350_v57 = vld [vmem:[%s2158_s28 + $0x1c8] sm:$0xff]  ;;  %v351_v58 = vld [vmem:[%s2158_s28 + $0x1d0] sm:$0xff] }
  0x33   : > { %477 = vst [vmem:[%s2163_s29 + $0x8c0] sm:$0xff] %v349_v56  ;;  %v352_v59 = vld [vmem:[%s2158_s28 + $0x1d8] sm:$0xff]  ;;  %478 = vst [vmem:[%s2163_s29 + $0x8e8] sm:$0xff] %v350_v57  ;;  %v353_v60 = vld [vmem:[%s2158_s28 + $0x1e0] sm:$0xff] }
  0x34   : > { %479 = vst [vmem:[%s2163_s29 + $0x910] sm:$0xff] %v351_v58  ;;  %480 = vst [vmem:[%s2163_s29 + $0x938] sm:$0xff] %v352_v59  ;;  %v354_v61 = vld [vmem:[%s2158_s28 + $0x1e8] sm:$0xff]  ;;  %v355_v62 = vld [vmem:[%s2158_s28 + $0x1f0] sm:$0xff] }
  0x35   : > { %481 = vst [vmem:[%s2163_s29 + $0x960] sm:$0xff] %v353_v60  ;;  %482 = vst [vmem:[%s2163_s29 + $0x988] sm:$0xff] %v354_v61  ;;  %v356_v63 = vld [vmem:[%s2158_s28 + $0x1f8] sm:$0xff]  ;;  %v357_v0 = vld [vmem:[%s2158_s28 + $0x200] sm:$0xff] }
  0x36   : > { %483 = vst [vmem:[%s2163_s29 + $0x9b0] sm:$0xff] %v355_v62  ;;  %v358_v1 = vld [vmem:[%s2158_s28 + $0x208] sm:$0xff]  ;;  %484 = vst [vmem:[%s2163_s29 + $0x9d8] sm:$0xff] %v356_v63  ;;  %v359_v2 = vld [vmem:[%s2158_s28 + $0x210] sm:$0xff] }
  0x37   : > { %485 = vst [vmem:[%s2163_s29 + $0xa00] sm:$0xff] %v357_v0  ;;  %486 = vst [vmem:[%s2163_s29 + $0xa28] sm:$0xff] %v358_v1  ;;  %v360_v3 = vld [vmem:[%s2158_s28 + $0x218] sm:$0xff]  ;;  %v361_v4 = vld [vmem:[%s2158_s28 + $0x220] sm:$0xff] }
  0x38   : > { %487 = vst [vmem:[%s2163_s29 + $0xa50] sm:$0xff] %v359_v2  ;;  %488 = vst [vmem:[%s2163_s29 + $0xa78] sm:$0xff] %v360_v3  ;;  %v362_v5 = vld [vmem:[%s2158_s28 + $0x228] sm:$0xff]  ;;  %v363_v6 = vld [vmem:[%s2158_s28 + $0x230] sm:$0xff] }
  0x39   : > { %489 = vst [vmem:[%s2163_s29 + $0xaa0] sm:$0xff] %v361_v4  ;;  %v364_v7 = vld [vmem:[%s2158_s28 + $0x238] sm:$0xff]  ;;  %490 = vst [vmem:[%s2163_s29 + $0xac8] sm:$0xff] %v362_v5  ;;  %v365_v8 = vld [vmem:[%s2158_s28 + $0x240] sm:$0xff] }
  0x3a   : > { %491 = vst [vmem:[%s2163_s29 + $0xaf0] sm:$0xff] %v363_v6  ;;  %492 = vst [vmem:[%s2163_s29 + $0xb18] sm:$0xff] %v364_v7  ;;  %v366_v9 = vld [vmem:[%s2158_s28 + $0x248] sm:$0xff]  ;;  %v367_v10 = vld [vmem:[%s2158_s28 + $0x250] sm:$0xff] }
  0x3b   : > { %493 = vst [vmem:[%s2163_s29 + $0xb40] sm:$0xff] %v365_v8  ;;  %494 = vst [vmem:[%s2163_s29 + $0xb68] sm:$0xff] %v366_v9  ;;  %v368_v11 = vld [vmem:[%s2158_s28 + $0x258] sm:$0xff]  ;;  %v369_v12 = vld [vmem:[%s2158_s28 + $0x260] sm:$0xff] }
  0x3c   : > { %495 = vst [vmem:[%s2163_s29 + $0xb90] sm:$0xff] %v367_v10  ;;  %v370_v13 = vld [vmem:[%s2158_s28 + $0x268] sm:$0xff]  ;;  %496 = vst [vmem:[%s2163_s29 + $0xbb8] sm:$0xff] %v368_v11  ;;  %v371_v14 = vld [vmem:[%s2158_s28 + $0x270] sm:$0xff] }
  0x3d   : > { %497 = vst [vmem:[%s2163_s29 + $0xbe0] sm:$0xff] %v369_v12  ;;  %498 = vst [vmem:[%s2163_s29 + $0xc08] sm:$0xff] %v370_v13  ;;  %v372_v15 = vld [vmem:[%s2158_s28 + $0x278] sm:$0xff]  ;;  %v373_v16 = vld [vmem:[%s2158_s28 + $0x280] sm:$0xff] }
  0x3e   : > { %499 = vst [vmem:[%s2163_s29 + $0xc30] sm:$0xff] %v371_v14  ;;  %500 = vst [vmem:[%s2163_s29 + $0xc58] sm:$0xff] %v372_v15  ;;  %v374_v17 = vld [vmem:[%s2158_s28 + $0x288] sm:$0xff]  ;;  %v375_v18 = vld [vmem:[%s2158_s28 + $0x290] sm:$0xff] }
  0x3f   : > { %501 = vst [vmem:[%s2163_s29 + $0xc80] sm:$0xff] %v373_v16  ;;  %v376_v19 = vld [vmem:[%s2158_s28 + $0x298] sm:$0xff]  ;;  %502 = vst [vmem:[%s2163_s29 + $0xca8] sm:$0xff] %v374_v17  ;;  %v377_v20 = vld [vmem:[%s2158_s28 + $0x2a0] sm:$0xff] }
  0x40   : > { %503 = vst [vmem:[%s2163_s29 + $0xcd0] sm:$0xff] %v375_v18  ;;  %504 = vst [vmem:[%s2163_s29 + $0xcf8] sm:$0xff] %v376_v19  ;;  %v378_v21 = vld [vmem:[%s2158_s28 + $0x2a8] sm:$0xff]  ;;  %v379_v22 = vld [vmem:[%s2158_s28 + $0x2b0] sm:$0xff] }
  0x41   : > { %505 = vst [vmem:[%s2163_s29 + $0xd20] sm:$0xff] %v377_v20  ;;  %506 = vst [vmem:[%s2163_s29 + $0xd48] sm:$0xff] %v378_v21  ;;  %v380_v23 = vld [vmem:[%s2158_s28 + $0x2b8] sm:$0xff]  ;;  %v381_v24 = vld [vmem:[%s2158_s28 + $0x2c0] sm:$0xff] }
  0x42   : > { %507 = vst [vmem:[%s2163_s29 + $0xd70] sm:$0xff] %v379_v22  ;;  %v382_v25 = vld [vmem:[%s2158_s28 + $0x2c8] sm:$0xff]  ;;  %508 = vst [vmem:[%s2163_s29 + $0xd98] sm:$0xff] %v380_v23  ;;  %v383_v26 = vld [vmem:[%s2158_s28 + $0x2d0] sm:$0xff] }
  0x43   : > { %509 = vst [vmem:[%s2163_s29 + $0xdc0] sm:$0xff] %v381_v24  ;;  %510 = vst [vmem:[%s2163_s29 + $0xde8] sm:$0xff] %v382_v25  ;;  %v384_v27 = vld [vmem:[%s2158_s28 + $0x2d8] sm:$0xff]  ;;  %v385_v28 = vld [vmem:[%s2158_s28 + $0x2e0] sm:$0xff] }
  0x44   : > { %511 = vst [vmem:[%s2163_s29 + $0xe10] sm:$0xff] %v383_v26  ;;  %512 = vst [vmem:[%s2163_s29 + $0xe38] sm:$0xff] %v384_v27  ;;  %v386_v29 = vld [vmem:[%s2158_s28 + $0x2e8] sm:$0xff]  ;;  %v387_v30 = vld [vmem:[%s2158_s28 + $0x2f0] sm:$0xff] }
  0x45   : > { %513 = vst [vmem:[%s2163_s29 + $0xe60] sm:$0xff] %v385_v28  ;;  %v388_v31 = vld [vmem:[%s2158_s28 + $0x2f8] sm:$0xff]  ;;  %514 = vst [vmem:[%s2163_s29 + $0xe88] sm:$0xff] %v386_v29  ;;  %v389_v32 = vld [vmem:[%s2158_s28 + $0x300] sm:$0xff] }
  0x46   : > { %515 = vst [vmem:[%s2163_s29 + $0xeb0] sm:$0xff] %v387_v30  ;;  %516 = vst [vmem:[%s2163_s29 + $0xed8] sm:$0xff] %v388_v31  ;;  %v390_v33 = vld [vmem:[%s2158_s28 + $0x308] sm:$0xff]  ;;  %v391_v34 = vld [vmem:[%s2158_s28 + $0x310] sm:$0xff] }
  0x47   : > { %517 = vst [vmem:[%s2163_s29 + $0xf00] sm:$0xff] %v389_v32  ;;  %518 = vst [vmem:[%s2163_s29 + $0xf28] sm:$0xff] %v390_v33  ;;  %v392_v35 = vld [vmem:[%s2158_s28 + $0x318] sm:$0xff]  ;;  %v393_v36 = vld [vmem:[%s2158_s28 + $0x320] sm:$0xff] }
  0x48   : > { %519 = vst [vmem:[%s2163_s29 + $0xf50] sm:$0xff] %v391_v34  ;;  %v394_v37 = vld [vmem:[%s2158_s28 + $0x328] sm:$0xff]  ;;  %520 = vst [vmem:[%s2163_s29 + $0xf78] sm:$0xff] %v392_v35  ;;  %v395_v38 = vld [vmem:[%s2158_s28 + $0x330] sm:$0xff] }
  0x49   : > { %521 = vst [vmem:[%s2163_s29 + $0xfa0] sm:$0xff] %v393_v36  ;;  %522 = vst [vmem:[%s2163_s29 + $0xfc8] sm:$0xff] %v394_v37  ;;  %v396_v39 = vld [vmem:[%s2158_s28 + $0x338] sm:$0xff]  ;;  %v397_v40 = vld [vmem:[%s2158_s28 + $0x340] sm:$0xff] }
  0x4a   : > { %523 = vst [vmem:[%s2163_s29 + $0xff0] sm:$0xff] %v395_v38  ;;  %524 = vst [vmem:[%s2163_s29 + $0x1018] sm:$0xff] %v396_v39  ;;  %v398_v41 = vld [vmem:[%s2158_s28 + $0x348] sm:$0xff]  ;;  %v399_v42 = vld [vmem:[%s2158_s28 + $0x350] sm:$0xff] }
  0x4b   : > { %525 = vst [vmem:[%s2163_s29 + $0x1040] sm:$0xff] %v397_v40  ;;  %v400_v43 = vld [vmem:[%s2158_s28 + $0x358] sm:$0xff]  ;;  %526 = vst [vmem:[%s2163_s29 + $0x1068] sm:$0xff] %v398_v41  ;;  %v401_v44 = vld [vmem:[%s2158_s28 + $0x360] sm:$0xff] }
  0x4c   : > { %527 = vst [vmem:[%s2163_s29 + $0x1090] sm:$0xff] %v399_v42  ;;  %528 = vst [vmem:[%s2163_s29 + $0x10b8] sm:$0xff] %v400_v43  ;;  %v402_v45 = vld [vmem:[%s2158_s28 + $0x368] sm:$0xff]  ;;  %v403_v46 = vld [vmem:[%s2158_s28 + $0x370] sm:$0xff] }
  0x4d   : > { %529 = vst [vmem:[%s2163_s29 + $0x10e0] sm:$0xff] %v401_v44  ;;  %530 = vst [vmem:[%s2163_s29 + $0x1108] sm:$0xff] %v402_v45  ;;  %v404_v47 = vld [vmem:[%s2158_s28 + $0x378] sm:$0xff]  ;;  %v405_v48 = vld [vmem:[%s2158_s28 + $0x380] sm:$0xff] }
  0x4e   : > { %531 = vst [vmem:[%s2163_s29 + $0x1130] sm:$0xff] %v403_v46  ;;  %v406_v49 = vld [vmem:[%s2158_s28 + $0x388] sm:$0xff]  ;;  %532 = vst [vmem:[%s2163_s29 + $0x1158] sm:$0xff] %v404_v47  ;;  %v407_v50 = vld [vmem:[%s2158_s28 + $0x390] sm:$0xff] }
  0x4f   : > { %533 = vst [vmem:[%s2163_s29 + $0x1180] sm:$0xff] %v405_v48  ;;  %534 = vst [vmem:[%s2163_s29 + $0x11a8] sm:$0xff] %v406_v49  ;;  %v408_v51 = vld [vmem:[%s2158_s28 + $0x398] sm:$0xff]  ;;  %v409_v52 = vld [vmem:[%s2158_s28 + $0x3a0] sm:$0xff] }
  0x50   : > { %535 = vst [vmem:[%s2163_s29 + $0x11d0] sm:$0xff] %v407_v50  ;;  %536 = vst [vmem:[%s2163_s29 + $0x11f8] sm:$0xff] %v408_v51  ;;  %v410_v53 = vld [vmem:[%s2158_s28 + $0x3a8] sm:$0xff]  ;;  %v411_v54 = vld [vmem:[%s2158_s28 + $0x3b0] sm:$0xff] }
  0x51   : > { %537 = vst [vmem:[%s2163_s29 + $0x1220] sm:$0xff] %v409_v52  ;;  %v412_v55 = vld [vmem:[%s2158_s28 + $0x3b8] sm:$0xff]  ;;  %538 = vst [vmem:[%s2163_s29 + $0x1248] sm:$0xff] %v410_v53  ;;  %v413_v56 = vld [vmem:[%s2158_s28 + $0x3c0] sm:$0xff] }
  0x52   : > { %539 = vst [vmem:[%s2163_s29 + $0x1270] sm:$0xff] %v411_v54  ;;  %540 = vst [vmem:[%s2163_s29 + $0x1298] sm:$0xff] %v412_v55  ;;  %v414_v57 = vld [vmem:[%s2158_s28 + $0x3c8] sm:$0xff]  ;;  %v415_v58 = vld [vmem:[%s2158_s28 + $0x3d0] sm:$0xff] }
  0x53   : > { %541 = vst [vmem:[%s2163_s29 + $0x12c0] sm:$0xff] %v413_v56  ;;  %542 = vst [vmem:[%s2163_s29 + $0x12e8] sm:$0xff] %v414_v57  ;;  %v416_v59 = vld [vmem:[%s2158_s28 + $0x3d8] sm:$0xff]  ;;  %v417_v60 = vld [vmem:[%s2158_s28 + $0x3e0] sm:$0xff] }
  0x54   : > { %543 = vst [vmem:[%s2163_s29 + $0x1310] sm:$0xff] %v415_v58  ;;  %v418_v61 = vld [vmem:[%s2158_s28 + $0x3e8] sm:$0xff]  ;;  %544 = vst [vmem:[%s2163_s29 + $0x1338] sm:$0xff] %v416_v59  ;;  %v419_v62 = vld [vmem:[%s2158_s28 + $0x3f0] sm:$0xff] }
  0x55   : > { %545 = vst [vmem:[%s2163_s29 + $0x1360] sm:$0xff] %v417_v60  ;;  %546 = vst [vmem:[%s2163_s29 + $0x1388] sm:$0xff] %v418_v61  ;;  %v420_v63 = vld [vmem:[%s2158_s28 + $0x3f8] sm:$0xff]  ;;  %v549_v0 = vld [vmem:[%s2399_s6] sm:$0xff] }
  0x56   : > { %547 = vst [vmem:[%s2163_s29 + $0x13b0] sm:$0xff] %v419_v62  ;;  %548 = vst [vmem:[%s2163_s29 + $0x13d8] sm:$0xff] %v420_v63  ;;  %v550_v1 = vld [vmem:[%s2399_s6 + $0x8] sm:$0xff]  ;;  %v551_v2 = vld [vmem:[%s2399_s6 + $0x10] sm:$0xff] }
  0x57   : > { %805 = vst [vmem:[%s2163_s29 + $0x8] sm:$0xff] %v549_v0  ;;  %v552_v3 = vld [vmem:[%s2399_s6 + $0x18] sm:$0xff]  ;;  %806 = vst [vmem:[%s2163_s29 + $0x10] sm:$0xff] %v550_v1  ;;  %v553_v4 = vld [vmem:[%s2399_s6 + $0x20] sm:$0xff] }
  0x58   : > { %807 = vst [vmem:[%s2163_s29 + $0x30] sm:$0xff] %v551_v2  ;;  %808 = vst [vmem:[%s2163_s29 + $0x38] sm:$0xff] %v552_v3  ;;  %v554_v5 = vld [vmem:[%s2399_s6 + $0x28] sm:$0xff]  ;;  %v555_v6 = vld [vmem:[%s2399_s6 + $0x30] sm:$0xff] }
  0x59   : > { %809 = vst [vmem:[%s2163_s29 + $0x58] sm:$0xff] %v553_v4  ;;  %810 = vst [vmem:[%s2163_s29 + $0x60] sm:$0xff] %v554_v5  ;;  %v556_v7 = vld [vmem:[%s2399_s6 + $0x38] sm:$0xff]  ;;  %v557_v8 = vld [vmem:[%s2399_s6 + $0x40] sm:$0xff] }
  0x5a   : > { %811 = vst [vmem:[%s2163_s29 + $0x80] sm:$0xff] %v555_v6  ;;  %v558_v9 = vld [vmem:[%s2399_s6 + $0x48] sm:$0xff]  ;;  %812 = vst [vmem:[%s2163_s29 + $0x88] sm:$0xff] %v556_v7  ;;  %v559_v10 = vld [vmem:[%s2399_s6 + $0x50] sm:$0xff] }
  0x5b   : > { %813 = vst [vmem:[%s2163_s29 + $0xa8] sm:$0xff] %v557_v8  ;;  %814 = vst [vmem:[%s2163_s29 + $0xb0] sm:$0xff] %v558_v9  ;;  %v560_v11 = vld [vmem:[%s2399_s6 + $0x58] sm:$0xff]  ;;  %v561_v12 = vld [vmem:[%s2399_s6 + $0x60] sm:$0xff] }
  0x5c   : > { %815 = vst [vmem:[%s2163_s29 + $0xd0] sm:$0xff] %v559_v10  ;;  %816 = vst [vmem:[%s2163_s29 + $0xd8] sm:$0xff] %v560_v11  ;;  %v562_v13 = vld [vmem:[%s2399_s6 + $0x68] sm:$0xff]  ;;  %v563_v14 = vld [vmem:[%s2399_s6 + $0x70] sm:$0xff] }
  0x5d   : > { %817 = vst [vmem:[%s2163_s29 + $0xf8] sm:$0xff] %v561_v12  ;;  %v564_v15 = vld [vmem:[%s2399_s6 + $0x78] sm:$0xff]  ;;  %818 = vst [vmem:[%s2163_s29 + $0x100] sm:$0xff] %v562_v13  ;;  %v565_v16 = vld [vmem:[%s2399_s6 + $0x80] sm:$0xff] }
  0x5e   : > { %819 = vst [vmem:[%s2163_s29 + $0x120] sm:$0xff] %v563_v14  ;;  %820 = vst [vmem:[%s2163_s29 + $0x128] sm:$0xff] %v564_v15  ;;  %v566_v17 = vld [vmem:[%s2399_s6 + $0x88] sm:$0xff]  ;;  %v567_v18 = vld [vmem:[%s2399_s6 + $0x90] sm:$0xff] }
  0x5f   : > { %821 = vst [vmem:[%s2163_s29 + $0x148] sm:$0xff] %v565_v16  ;;  %822 = vst [vmem:[%s2163_s29 + $0x150] sm:$0xff] %v566_v17  ;;  %v568_v19 = vld [vmem:[%s2399_s6 + $0x98] sm:$0xff]  ;;  %v569_v20 = vld [vmem:[%s2399_s6 + $0xa0] sm:$0xff] }
  0x60   : > { %823 = vst [vmem:[%s2163_s29 + $0x170] sm:$0xff] %v567_v18  ;;  %v570_v21 = vld [vmem:[%s2399_s6 + $0xa8] sm:$0xff]  ;;  %824 = vst [vmem:[%s2163_s29 + $0x178] sm:$0xff] %v568_v19  ;;  %v571_v22 = vld [vmem:[%s2399_s6 + $0xb0] sm:$0xff] }
  0x61   : > { %825 = vst [vmem:[%s2163_s29 + $0x198] sm:$0xff] %v569_v20  ;;  %826 = vst [vmem:[%s2163_s29 + $0x1a0] sm:$0xff] %v570_v21  ;;  %v572_v23 = vld [vmem:[%s2399_s6 + $0xb8] sm:$0xff]  ;;  %v573_v24 = vld [vmem:[%s2399_s6 + $0xc0] sm:$0xff] }
  0x62   : > { %827 = vst [vmem:[%s2163_s29 + $0x1c0] sm:$0xff] %v571_v22  ;;  %828 = vst [vmem:[%s2163_s29 + $0x1c8] sm:$0xff] %v572_v23  ;;  %v574_v25 = vld [vmem:[%s2399_s6 + $0xc8] sm:$0xff]  ;;  %v575_v26 = vld [vmem:[%s2399_s6 + $0xd0] sm:$0xff] }
  0x63   : > { %829 = vst [vmem:[%s2163_s29 + $0x1e8] sm:$0xff] %v573_v24  ;;  %v576_v27 = vld [vmem:[%s2399_s6 + $0xd8] sm:$0xff]  ;;  %830 = vst [vmem:[%s2163_s29 + $0x1f0] sm:$0xff] %v574_v25  ;;  %v577_v28 = vld [vmem:[%s2399_s6 + $0xe0] sm:$0xff] }
  0x64   : > { %831 = vst [vmem:[%s2163_s29 + $0x210] sm:$0xff] %v575_v26  ;;  %832 = vst [vmem:[%s2163_s29 + $0x218] sm:$0xff] %v576_v27  ;;  %v578_v29 = vld [vmem:[%s2399_s6 + $0xe8] sm:$0xff]  ;;  %v579_v30 = vld [vmem:[%s2399_s6 + $0xf0] sm:$0xff] }
  0x65   : > { %833 = vst [vmem:[%s2163_s29 + $0x238] sm:$0xff] %v577_v28  ;;  %834 = vst [vmem:[%s2163_s29 + $0x240] sm:$0xff] %v578_v29  ;;  %v580_v31 = vld [vmem:[%s2399_s6 + $0xf8] sm:$0xff]  ;;  %v581_v32 = vld [vmem:[%s2399_s6 + $0x100] sm:$0xff] }
  0x66   : > { %835 = vst [vmem:[%s2163_s29 + $0x260] sm:$0xff] %v579_v30  ;;  %v582_v33 = vld [vmem:[%s2399_s6 + $0x108] sm:$0xff]  ;;  %836 = vst [vmem:[%s2163_s29 + $0x268] sm:$0xff] %v580_v31  ;;  %v583_v34 = vld [vmem:[%s2399_s6 + $0x110] sm:$0xff] }
  0x67   : > { %837 = vst [vmem:[%s2163_s29 + $0x288] sm:$0xff] %v581_v32  ;;  %838 = vst [vmem:[%s2163_s29 + $0x290] sm:$0xff] %v582_v33  ;;  %v584_v35 = vld [vmem:[%s2399_s6 + $0x118] sm:$0xff]  ;;  %v585_v36 = vld [vmem:[%s2399_s6 + $0x120] sm:$0xff] }
  0x68   : > { %839 = vst [vmem:[%s2163_s29 + $0x2b0] sm:$0xff] %v583_v34  ;;  %840 = vst [vmem:[%s2163_s29 + $0x2b8] sm:$0xff] %v584_v35  ;;  %v586_v37 = vld [vmem:[%s2399_s6 + $0x128] sm:$0xff]  ;;  %v587_v38 = vld [vmem:[%s2399_s6 + $0x130] sm:$0xff] }
  0x69   : > { %841 = vst [vmem:[%s2163_s29 + $0x2d8] sm:$0xff] %v585_v36  ;;  %v588_v39 = vld [vmem:[%s2399_s6 + $0x138] sm:$0xff]  ;;  %842 = vst [vmem:[%s2163_s29 + $0x2e0] sm:$0xff] %v586_v37  ;;  %v589_v40 = vld [vmem:[%s2399_s6 + $0x140] sm:$0xff] }
  0x6a   : > { %843 = vst [vmem:[%s2163_s29 + $0x300] sm:$0xff] %v587_v38  ;;  %844 = vst [vmem:[%s2163_s29 + $0x308] sm:$0xff] %v588_v39  ;;  %v590_v41 = vld [vmem:[%s2399_s6 + $0x148] sm:$0xff]  ;;  %v591_v42 = vld [vmem:[%s2399_s6 + $0x150] sm:$0xff] }
  0x6b   : > { %845 = vst [vmem:[%s2163_s29 + $0x328] sm:$0xff] %v589_v40  ;;  %846 = vst [vmem:[%s2163_s29 + $0x330] sm:$0xff] %v590_v41  ;;  %v592_v43 = vld [vmem:[%s2399_s6 + $0x158] sm:$0xff]  ;;  %v593_v44 = vld [vmem:[%s2399_s6 + $0x160] sm:$0xff] }
  0x6c   : > { %847 = vst [vmem:[%s2163_s29 + $0x350] sm:$0xff] %v591_v42  ;;  %v594_v45 = vld [vmem:[%s2399_s6 + $0x168] sm:$0xff]  ;;  %848 = vst [vmem:[%s2163_s29 + $0x358] sm:$0xff] %v592_v43  ;;  %v595_v46 = vld [vmem:[%s2399_s6 + $0x170] sm:$0xff] }
  0x6d   : > { %849 = vst [vmem:[%s2163_s29 + $0x378] sm:$0xff] %v593_v44  ;;  %850 = vst [vmem:[%s2163_s29 + $0x380] sm:$0xff] %v594_v45  ;;  %v596_v47 = vld [vmem:[%s2399_s6 + $0x178] sm:$0xff]  ;;  %v597_v48 = vld [vmem:[%s2399_s6 + $0x180] sm:$0xff] }
  0x6e   : > { %851 = vst [vmem:[%s2163_s29 + $0x3a0] sm:$0xff] %v595_v46  ;;  %852 = vst [vmem:[%s2163_s29 + $0x3a8] sm:$0xff] %v596_v47  ;;  %v598_v49 = vld [vmem:[%s2399_s6 + $0x188] sm:$0xff]  ;;  %v599_v50 = vld [vmem:[%s2399_s6 + $0x190] sm:$0xff] }
  0x6f   : > { %853 = vst [vmem:[%s2163_s29 + $0x3c8] sm:$0xff] %v597_v48  ;;  %v600_v51 = vld [vmem:[%s2399_s6 + $0x198] sm:$0xff]  ;;  %854 = vst [vmem:[%s2163_s29 + $0x3d0] sm:$0xff] %v598_v49  ;;  %v601_v52 = vld [vmem:[%s2399_s6 + $0x1a0] sm:$0xff] }
  0x70   : > { %855 = vst [vmem:[%s2163_s29 + $0x3f0] sm:$0xff] %v599_v50  ;;  %856 = vst [vmem:[%s2163_s29 + $0x3f8] sm:$0xff] %v600_v51  ;;  %v602_v53 = vld [vmem:[%s2399_s6 + $0x1a8] sm:$0xff]  ;;  %v603_v54 = vld [vmem:[%s2399_s6 + $0x1b0] sm:$0xff] }
  0x71   : > { %857 = vst [vmem:[%s2163_s29 + $0x418] sm:$0xff] %v601_v52  ;;  %858 = vst [vmem:[%s2163_s29 + $0x420] sm:$0xff] %v602_v53  ;;  %v604_v55 = vld [vmem:[%s2399_s6 + $0x1b8] sm:$0xff]  ;;  %v605_v56 = vld [vmem:[%s2399_s6 + $0x1c0] sm:$0xff] }
  0x72   : > { %859 = vst [vmem:[%s2163_s29 + $0x440] sm:$0xff] %v603_v54  ;;  %v606_v57 = vld [vmem:[%s2399_s6 + $0x1c8] sm:$0xff]  ;;  %860 = vst [vmem:[%s2163_s29 + $0x448] sm:$0xff] %v604_v55  ;;  %v607_v58 = vld [vmem:[%s2399_s6 + $0x1d0] sm:$0xff] }
  0x73   : > { %861 = vst [vmem:[%s2163_s29 + $0x468] sm:$0xff] %v605_v56  ;;  %862 = vst [vmem:[%s2163_s29 + $0x470] sm:$0xff] %v606_v57  ;;  %v608_v59 = vld [vmem:[%s2399_s6 + $0x1d8] sm:$0xff]  ;;  %v609_v60 = vld [vmem:[%s2399_s6 + $0x1e0] sm:$0xff] }
  0x74   : > { %863 = vst [vmem:[%s2163_s29 + $0x490] sm:$0xff] %v607_v58  ;;  %864 = vst [vmem:[%s2163_s29 + $0x498] sm:$0xff] %v608_v59  ;;  %v610_v61 = vld [vmem:[%s2399_s6 + $0x1e8] sm:$0xff]  ;;  %v611_v62 = vld [vmem:[%s2399_s6 + $0x1f0] sm:$0xff] }
  0x75   : > { %865 = vst [vmem:[%s2163_s29 + $0x4b8] sm:$0xff] %v609_v60  ;;  %v612_v63 = vld [vmem:[%s2399_s6 + $0x1f8] sm:$0xff]  ;;  %866 = vst [vmem:[%s2163_s29 + $0x4c0] sm:$0xff] %v610_v61  ;;  %v613_v0 = vld [vmem:[%s2399_s6 + $0x200] sm:$0xff] }
  0x76   : > { %867 = vst [vmem:[%s2163_s29 + $0x4e0] sm:$0xff] %v611_v62  ;;  %868 = vst [vmem:[%s2163_s29 + $0x4e8] sm:$0xff] %v612_v63  ;;  %v614_v1 = vld [vmem:[%s2399_s6 + $0x208] sm:$0xff]  ;;  %v615_v2 = vld [vmem:[%s2399_s6 + $0x210] sm:$0xff] }
  0x77   : > { %869 = vst [vmem:[%s2163_s29 + $0x508] sm:$0xff] %v613_v0  ;;  %870 = vst [vmem:[%s2163_s29 + $0x510] sm:$0xff] %v614_v1  ;;  %v616_v3 = vld [vmem:[%s2399_s6 + $0x218] sm:$0xff]  ;;  %v617_v4 = vld [vmem:[%s2399_s6 + $0x220] sm:$0xff] }
  0x78   : > { %871 = vst [vmem:[%s2163_s29 + $0x530] sm:$0xff] %v615_v2  ;;  %v618_v5 = vld [vmem:[%s2399_s6 + $0x228] sm:$0xff]  ;;  %872 = vst [vmem:[%s2163_s29 + $0x538] sm:$0xff] %v616_v3  ;;  %v619_v6 = vld [vmem:[%s2399_s6 + $0x230] sm:$0xff] }
  0x79   : > { %873 = vst [vmem:[%s2163_s29 + $0x558] sm:$0xff] %v617_v4  ;;  %874 = vst [vmem:[%s2163_s29 + $0x560] sm:$0xff] %v618_v5  ;;  %v620_v7 = vld [vmem:[%s2399_s6 + $0x238] sm:$0xff]  ;;  %v621_v8 = vld [vmem:[%s2399_s6 + $0x240] sm:$0xff] }
  0x7a   : > { %875 = vst [vmem:[%s2163_s29 + $0x580] sm:$0xff] %v619_v6  ;;  %876 = vst [vmem:[%s2163_s29 + $0x588] sm:$0xff] %v620_v7  ;;  %v622_v9 = vld [vmem:[%s2399_s6 + $0x248] sm:$0xff]  ;;  %v623_v10 = vld [vmem:[%s2399_s6 + $0x250] sm:$0xff] }
  0x7b   : > { %877 = vst [vmem:[%s2163_s29 + $0x5a8] sm:$0xff] %v621_v8  ;;  %v624_v11 = vld [vmem:[%s2399_s6 + $0x258] sm:$0xff]  ;;  %878 = vst [vmem:[%s2163_s29 + $0x5b0] sm:$0xff] %v622_v9  ;;  %v625_v12 = vld [vmem:[%s2399_s6 + $0x260] sm:$0xff] }
  0x7c   : > { %879 = vst [vmem:[%s2163_s29 + $0x5d0] sm:$0xff] %v623_v10  ;;  %880 = vst [vmem:[%s2163_s29 + $0x5d8] sm:$0xff] %v624_v11  ;;  %v626_v13 = vld [vmem:[%s2399_s6 + $0x268] sm:$0xff]  ;;  %v627_v14 = vld [vmem:[%s2399_s6 + $0x270] sm:$0xff] }
  0x7d   : > { %881 = vst [vmem:[%s2163_s29 + $0x5f8] sm:$0xff] %v625_v12  ;;  %882 = vst [vmem:[%s2163_s29 + $0x600] sm:$0xff] %v626_v13  ;;  %v628_v15 = vld [vmem:[%s2399_s6 + $0x278] sm:$0xff]  ;;  %v629_v16 = vld [vmem:[%s2399_s6 + $0x280] sm:$0xff] }
  0x7e   : > { %883 = vst [vmem:[%s2163_s29 + $0x620] sm:$0xff] %v627_v14  ;;  %v630_v17 = vld [vmem:[%s2399_s6 + $0x288] sm:$0xff]  ;;  %884 = vst [vmem:[%s2163_s29 + $0x628] sm:$0xff] %v628_v15  ;;  %v631_v18 = vld [vmem:[%s2399_s6 + $0x290] sm:$0xff] }
  0x7f   : > { %885 = vst [vmem:[%s2163_s29 + $0x648] sm:$0xff] %v629_v16  ;;  %886 = vst [vmem:[%s2163_s29 + $0x650] sm:$0xff] %v630_v17  ;;  %v632_v19 = vld [vmem:[%s2399_s6 + $0x298] sm:$0xff]  ;;  %v633_v20 = vld [vmem:[%s2399_s6 + $0x2a0] sm:$0xff] }
  0x80   : > { %887 = vst [vmem:[%s2163_s29 + $0x670] sm:$0xff] %v631_v18  ;;  %888 = vst [vmem:[%s2163_s29 + $0x678] sm:$0xff] %v632_v19  ;;  %v634_v21 = vld [vmem:[%s2399_s6 + $0x2a8] sm:$0xff]  ;;  %v635_v22 = vld [vmem:[%s2399_s6 + $0x2b0] sm:$0xff] }
  0x81   : > { %889 = vst [vmem:[%s2163_s29 + $0x698] sm:$0xff] %v633_v20  ;;  %v636_v23 = vld [vmem:[%s2399_s6 + $0x2b8] sm:$0xff]  ;;  %890 = vst [vmem:[%s2163_s29 + $0x6a0] sm:$0xff] %v634_v21  ;;  %v637_v24 = vld [vmem:[%s2399_s6 + $0x2c0] sm:$0xff] }
  0x82   : > { %891 = vst [vmem:[%s2163_s29 + $0x6c0] sm:$0xff] %v635_v22  ;;  %892 = vst [vmem:[%s2163_s29 + $0x6c8] sm:$0xff] %v636_v23  ;;  %v638_v25 = vld [vmem:[%s2399_s6 + $0x2c8] sm:$0xff]  ;;  %v639_v26 = vld [vmem:[%s2399_s6 + $0x2d0] sm:$0xff] }
  0x83   : > { %893 = vst [vmem:[%s2163_s29 + $0x6e8] sm:$0xff] %v637_v24  ;;  %894 = vst [vmem:[%s2163_s29 + $0x6f0] sm:$0xff] %v638_v25  ;;  %v640_v27 = vld [vmem:[%s2399_s6 + $0x2d8] sm:$0xff]  ;;  %v641_v28 = vld [vmem:[%s2399_s6 + $0x2e0] sm:$0xff] }
  0x84   : > { %895 = vst [vmem:[%s2163_s29 + $0x710] sm:$0xff] %v639_v26  ;;  %v642_v29 = vld [vmem:[%s2399_s6 + $0x2e8] sm:$0xff]  ;;  %896 = vst [vmem:[%s2163_s29 + $0x718] sm:$0xff] %v640_v27  ;;  %v643_v30 = vld [vmem:[%s2399_s6 + $0x2f0] sm:$0xff] }
  0x85   : > { %897 = vst [vmem:[%s2163_s29 + $0x738] sm:$0xff] %v641_v28  ;;  %898 = vst [vmem:[%s2163_s29 + $0x740] sm:$0xff] %v642_v29  ;;  %v644_v31 = vld [vmem:[%s2399_s6 + $0x2f8] sm:$0xff]  ;;  %v645_v32 = vld [vmem:[%s2399_s6 + $0x300] sm:$0xff] }
  0x86   : > { %899 = vst [vmem:[%s2163_s29 + $0x760] sm:$0xff] %v643_v30  ;;  %900 = vst [vmem:[%s2163_s29 + $0x768] sm:$0xff] %v644_v31  ;;  %v646_v33 = vld [vmem:[%s2399_s6 + $0x308] sm:$0xff]  ;;  %v647_v34 = vld [vmem:[%s2399_s6 + $0x310] sm:$0xff] }
  0x87   : > { %901 = vst [vmem:[%s2163_s29 + $0x788] sm:$0xff] %v645_v32  ;;  %v648_v35 = vld [vmem:[%s2399_s6 + $0x318] sm:$0xff]  ;;  %902 = vst [vmem:[%s2163_s29 + $0x790] sm:$0xff] %v646_v33  ;;  %v649_v36 = vld [vmem:[%s2399_s6 + $0x320] sm:$0xff] }
  0x88   : > { %903 = vst [vmem:[%s2163_s29 + $0x7b0] sm:$0xff] %v647_v34  ;;  %904 = vst [vmem:[%s2163_s29 + $0x7b8] sm:$0xff] %v648_v35  ;;  %v650_v37 = vld [vmem:[%s2399_s6 + $0x328] sm:$0xff]  ;;  %v651_v38 = vld [vmem:[%s2399_s6 + $0x330] sm:$0xff] }
  0x89   : > { %905 = vst [vmem:[%s2163_s29 + $0x7d8] sm:$0xff] %v649_v36  ;;  %906 = vst [vmem:[%s2163_s29 + $0x7e0] sm:$0xff] %v650_v37  ;;  %v652_v39 = vld [vmem:[%s2399_s6 + $0x338] sm:$0xff]  ;;  %v653_v40 = vld [vmem:[%s2399_s6 + $0x340] sm:$0xff] }
  0x8a   : > { %907 = vst [vmem:[%s2163_s29 + $0x800] sm:$0xff] %v651_v38  ;;  %v654_v41 = vld [vmem:[%s2399_s6 + $0x348] sm:$0xff]  ;;  %908 = vst [vmem:[%s2163_s29 + $0x808] sm:$0xff] %v652_v39  ;;  %v655_v42 = vld [vmem:[%s2399_s6 + $0x350] sm:$0xff] }
  0x8b   : > { %909 = vst [vmem:[%s2163_s29 + $0x828] sm:$0xff] %v653_v40  ;;  %910 = vst [vmem:[%s2163_s29 + $0x830] sm:$0xff] %v654_v41  ;;  %v656_v43 = vld [vmem:[%s2399_s6 + $0x358] sm:$0xff]  ;;  %v657_v44 = vld [vmem:[%s2399_s6 + $0x360] sm:$0xff] }
  0x8c   : > { %911 = vst [vmem:[%s2163_s29 + $0x850] sm:$0xff] %v655_v42  ;;  %912 = vst [vmem:[%s2163_s29 + $0x858] sm:$0xff] %v656_v43  ;;  %v658_v45 = vld [vmem:[%s2399_s6 + $0x368] sm:$0xff]  ;;  %v659_v46 = vld [vmem:[%s2399_s6 + $0x370] sm:$0xff] }
  0x8d   : > { %913 = vst [vmem:[%s2163_s29 + $0x878] sm:$0xff] %v657_v44  ;;  %v660_v47 = vld [vmem:[%s2399_s6 + $0x378] sm:$0xff]  ;;  %914 = vst [vmem:[%s2163_s29 + $0x880] sm:$0xff] %v658_v45  ;;  %v661_v48 = vld [vmem:[%s2399_s6 + $0x380] sm:$0xff] }
  0x8e   : > { %915 = vst [vmem:[%s2163_s29 + $0x8a0] sm:$0xff] %v659_v46  ;;  %916 = vst [vmem:[%s2163_s29 + $0x8a8] sm:$0xff] %v660_v47  ;;  %v662_v49 = vld [vmem:[%s2399_s6 + $0x388] sm:$0xff]  ;;  %v663_v50 = vld [vmem:[%s2399_s6 + $0x390] sm:$0xff] }
  0x8f   : > { %917 = vst [vmem:[%s2163_s29 + $0x8c8] sm:$0xff] %v661_v48  ;;  %918 = vst [vmem:[%s2163_s29 + $0x8d0] sm:$0xff] %v662_v49  ;;  %v664_v51 = vld [vmem:[%s2399_s6 + $0x398] sm:$0xff]  ;;  %v665_v52 = vld [vmem:[%s2399_s6 + $0x3a0] sm:$0xff] }
  0x90   : > { %919 = vst [vmem:[%s2163_s29 + $0x8f0] sm:$0xff] %v663_v50  ;;  %v666_v53 = vld [vmem:[%s2399_s6 + $0x3a8] sm:$0xff]  ;;  %920 = vst [vmem:[%s2163_s29 + $0x8f8] sm:$0xff] %v664_v51  ;;  %v667_v54 = vld [vmem:[%s2399_s6 + $0x3b0] sm:$0xff] }
  0x91   : > { %921 = vst [vmem:[%s2163_s29 + $0x918] sm:$0xff] %v665_v52  ;;  %922 = vst [vmem:[%s2163_s29 + $0x920] sm:$0xff] %v666_v53  ;;  %v668_v55 = vld [vmem:[%s2399_s6 + $0x3b8] sm:$0xff]  ;;  %v669_v56 = vld [vmem:[%s2399_s6 + $0x3c0] sm:$0xff] }
  0x92   : > { %923 = vst [vmem:[%s2163_s29 + $0x940] sm:$0xff] %v667_v54  ;;  %924 = vst [vmem:[%s2163_s29 + $0x948] sm:$0xff] %v668_v55  ;;  %v670_v57 = vld [vmem:[%s2399_s6 + $0x3c8] sm:$0xff]  ;;  %v671_v58 = vld [vmem:[%s2399_s6 + $0x3d0] sm:$0xff] }
  0x93   : > { %925 = vst [vmem:[%s2163_s29 + $0x968] sm:$0xff] %v669_v56  ;;  %v672_v59 = vld [vmem:[%s2399_s6 + $0x3d8] sm:$0xff]  ;;  %926 = vst [vmem:[%s2163_s29 + $0x970] sm:$0xff] %v670_v57  ;;  %v673_v60 = vld [vmem:[%s2399_s6 + $0x3e0] sm:$0xff] }
  0x94   : > { %927 = vst [vmem:[%s2163_s29 + $0x990] sm:$0xff] %v671_v58  ;;  %928 = vst [vmem:[%s2163_s29 + $0x998] sm:$0xff] %v672_v59  ;;  %v674_v61 = vld [vmem:[%s2399_s6 + $0x3e8] sm:$0xff]  ;;  %v675_v62 = vld [vmem:[%s2399_s6 + $0x3f0] sm:$0xff] }
  0x95   : > { %929 = vst [vmem:[%s2163_s29 + $0x9b8] sm:$0xff] %v673_v60  ;;  %930 = vst [vmem:[%s2163_s29 + $0x9c0] sm:$0xff] %v674_v61  ;;  %v676_v63 = vld [vmem:[%s2399_s6 + $0x3f8] sm:$0xff]  ;;  %v677_v0 = vld [vmem:[%s2399_s6 + $0x400] sm:$0xff] }
  0x96   : > { %931 = vst [vmem:[%s2163_s29 + $0x9e0] sm:$0xff] %v675_v62  ;;  %v678_v1 = vld [vmem:[%s2399_s6 + $0x408] sm:$0xff]  ;;  %932 = vst [vmem:[%s2163_s29 + $0x9e8] sm:$0xff] %v676_v63  ;;  %v679_v2 = vld [vmem:[%s2399_s6 + $0x410] sm:$0xff] }
  0x97   : > { %933 = vst [vmem:[%s2163_s29 + $0xa08] sm:$0xff] %v677_v0  ;;  %934 = vst [vmem:[%s2163_s29 + $0xa10] sm:$0xff] %v678_v1  ;;  %v680_v3 = vld [vmem:[%s2399_s6 + $0x418] sm:$0xff]  ;;  %v681_v4 = vld [vmem:[%s2399_s6 + $0x420] sm:$0xff] }
  0x98   : > { %935 = vst [vmem:[%s2163_s29 + $0xa30] sm:$0xff] %v679_v2  ;;  %936 = vst [vmem:[%s2163_s29 + $0xa38] sm:$0xff] %v680_v3  ;;  %v682_v5 = vld [vmem:[%s2399_s6 + $0x428] sm:$0xff]  ;;  %v683_v6 = vld [vmem:[%s2399_s6 + $0x430] sm:$0xff] }
  0x99   : > { %937 = vst [vmem:[%s2163_s29 + $0xa58] sm:$0xff] %v681_v4  ;;  %v684_v7 = vld [vmem:[%s2399_s6 + $0x438] sm:$0xff]  ;;  %938 = vst [vmem:[%s2163_s29 + $0xa60] sm:$0xff] %v682_v5  ;;  %v685_v8 = vld [vmem:[%s2399_s6 + $0x440] sm:$0xff] }
  0x9a   : > { %939 = vst [vmem:[%s2163_s29 + $0xa80] sm:$0xff] %v683_v6  ;;  %940 = vst [vmem:[%s2163_s29 + $0xa88] sm:$0xff] %v684_v7  ;;  %v686_v9 = vld [vmem:[%s2399_s6 + $0x448] sm:$0xff]  ;;  %v687_v10 = vld [vmem:[%s2399_s6 + $0x450] sm:$0xff] }
  0x9b   : > { %941 = vst [vmem:[%s2163_s29 + $0xaa8] sm:$0xff] %v685_v8  ;;  %942 = vst [vmem:[%s2163_s29 + $0xab0] sm:$0xff] %v686_v9  ;;  %v688_v11 = vld [vmem:[%s2399_s6 + $0x458] sm:$0xff]  ;;  %v689_v12 = vld [vmem:[%s2399_s6 + $0x460] sm:$0xff] }
  0x9c   : > { %943 = vst [vmem:[%s2163_s29 + $0xad0] sm:$0xff] %v687_v10  ;;  %v690_v13 = vld [vmem:[%s2399_s6 + $0x468] sm:$0xff]  ;;  %944 = vst [vmem:[%s2163_s29 + $0xad8] sm:$0xff] %v688_v11  ;;  %v691_v14 = vld [vmem:[%s2399_s6 + $0x470] sm:$0xff] }
  0x9d   : > { %945 = vst [vmem:[%s2163_s29 + $0xaf8] sm:$0xff] %v689_v12  ;;  %946 = vst [vmem:[%s2163_s29 + $0xb00] sm:$0xff] %v690_v13  ;;  %v692_v15 = vld [vmem:[%s2399_s6 + $0x478] sm:$0xff]  ;;  %v693_v16 = vld [vmem:[%s2399_s6 + $0x480] sm:$0xff] }
  0x9e   : > { %947 = vst [vmem:[%s2163_s29 + $0xb20] sm:$0xff] %v691_v14  ;;  %948 = vst [vmem:[%s2163_s29 + $0xb28] sm:$0xff] %v692_v15  ;;  %v694_v17 = vld [vmem:[%s2399_s6 + $0x488] sm:$0xff]  ;;  %v695_v18 = vld [vmem:[%s2399_s6 + $0x490] sm:$0xff] }
  0x9f   : > { %949 = vst [vmem:[%s2163_s29 + $0xb48] sm:$0xff] %v693_v16  ;;  %v696_v19 = vld [vmem:[%s2399_s6 + $0x498] sm:$0xff]  ;;  %950 = vst [vmem:[%s2163_s29 + $0xb50] sm:$0xff] %v694_v17  ;;  %v697_v20 = vld [vmem:[%s2399_s6 + $0x4a0] sm:$0xff] }
  0xa0   : > { %951 = vst [vmem:[%s2163_s29 + $0xb70] sm:$0xff] %v695_v18  ;;  %952 = vst [vmem:[%s2163_s29 + $0xb78] sm:$0xff] %v696_v19  ;;  %v698_v21 = vld [vmem:[%s2399_s6 + $0x4a8] sm:$0xff]  ;;  %v699_v22 = vld [vmem:[%s2399_s6 + $0x4b0] sm:$0xff] }
  0xa1   : > { %953 = vst [vmem:[%s2163_s29 + $0xb98] sm:$0xff] %v697_v20  ;;  %954 = vst [vmem:[%s2163_s29 + $0xba0] sm:$0xff] %v698_v21  ;;  %v700_v23 = vld [vmem:[%s2399_s6 + $0x4b8] sm:$0xff]  ;;  %v701_v24 = vld [vmem:[%s2399_s6 + $0x4c0] sm:$0xff] }
  0xa2   : > { %955 = vst [vmem:[%s2163_s29 + $0xbc0] sm:$0xff] %v699_v22  ;;  %v702_v25 = vld [vmem:[%s2399_s6 + $0x4c8] sm:$0xff]  ;;  %956 = vst [vmem:[%s2163_s29 + $0xbc8] sm:$0xff] %v700_v23  ;;  %v703_v26 = vld [vmem:[%s2399_s6 + $0x4d0] sm:$0xff] }
  0xa3   : > { %957 = vst [vmem:[%s2163_s29 + $0xbe8] sm:$0xff] %v701_v24  ;;  %958 = vst [vmem:[%s2163_s29 + $0xbf0] sm:$0xff] %v702_v25  ;;  %v704_v27 = vld [vmem:[%s2399_s6 + $0x4d8] sm:$0xff]  ;;  %v705_v28 = vld [vmem:[%s2399_s6 + $0x4e0] sm:$0xff] }
  0xa4   : > { %959 = vst [vmem:[%s2163_s29 + $0xc10] sm:$0xff] %v703_v26  ;;  %960 = vst [vmem:[%s2163_s29 + $0xc18] sm:$0xff] %v704_v27  ;;  %v706_v29 = vld [vmem:[%s2399_s6 + $0x4e8] sm:$0xff]  ;;  %v707_v30 = vld [vmem:[%s2399_s6 + $0x4f0] sm:$0xff] }
  0xa5   : > { %961 = vst [vmem:[%s2163_s29 + $0xc38] sm:$0xff] %v705_v28  ;;  %v708_v31 = vld [vmem:[%s2399_s6 + $0x4f8] sm:$0xff]  ;;  %962 = vst [vmem:[%s2163_s29 + $0xc40] sm:$0xff] %v706_v29  ;;  %v709_v32 = vld [vmem:[%s2399_s6 + $0x500] sm:$0xff] }
  0xa6   : > { %963 = vst [vmem:[%s2163_s29 + $0xc60] sm:$0xff] %v707_v30  ;;  %964 = vst [vmem:[%s2163_s29 + $0xc68] sm:$0xff] %v708_v31  ;;  %v710_v33 = vld [vmem:[%s2399_s6 + $0x508] sm:$0xff]  ;;  %v711_v34 = vld [vmem:[%s2399_s6 + $0x510] sm:$0xff] }
  0xa7   : > { %965 = vst [vmem:[%s2163_s29 + $0xc88] sm:$0xff] %v709_v32  ;;  %966 = vst [vmem:[%s2163_s29 + $0xc90] sm:$0xff] %v710_v33  ;;  %v712_v35 = vld [vmem:[%s2399_s6 + $0x518] sm:$0xff]  ;;  %v713_v36 = vld [vmem:[%s2399_s6 + $0x520] sm:$0xff] }
  0xa8   : > { %967 = vst [vmem:[%s2163_s29 + $0xcb0] sm:$0xff] %v711_v34  ;;  %v714_v37 = vld [vmem:[%s2399_s6 + $0x528] sm:$0xff]  ;;  %968 = vst [vmem:[%s2163_s29 + $0xcb8] sm:$0xff] %v712_v35  ;;  %v715_v38 = vld [vmem:[%s2399_s6 + $0x530] sm:$0xff] }
  0xa9   : > { %969 = vst [vmem:[%s2163_s29 + $0xcd8] sm:$0xff] %v713_v36  ;;  %970 = vst [vmem:[%s2163_s29 + $0xce0] sm:$0xff] %v714_v37  ;;  %v716_v39 = vld [vmem:[%s2399_s6 + $0x538] sm:$0xff]  ;;  %v717_v40 = vld [vmem:[%s2399_s6 + $0x540] sm:$0xff] }
  0xaa   : > { %971 = vst [vmem:[%s2163_s29 + $0xd00] sm:$0xff] %v715_v38  ;;  %972 = vst [vmem:[%s2163_s29 + $0xd08] sm:$0xff] %v716_v39  ;;  %v718_v41 = vld [vmem:[%s2399_s6 + $0x548] sm:$0xff]  ;;  %v719_v42 = vld [vmem:[%s2399_s6 + $0x550] sm:$0xff] }
  0xab   : > { %973 = vst [vmem:[%s2163_s29 + $0xd28] sm:$0xff] %v717_v40  ;;  %v720_v43 = vld [vmem:[%s2399_s6 + $0x558] sm:$0xff]  ;;  %974 = vst [vmem:[%s2163_s29 + $0xd30] sm:$0xff] %v718_v41  ;;  %v721_v44 = vld [vmem:[%s2399_s6 + $0x560] sm:$0xff] }
  0xac   : > { %975 = vst [vmem:[%s2163_s29 + $0xd50] sm:$0xff] %v719_v42  ;;  %976 = vst [vmem:[%s2163_s29 + $0xd58] sm:$0xff] %v720_v43  ;;  %v722_v45 = vld [vmem:[%s2399_s6 + $0x568] sm:$0xff]  ;;  %v723_v46 = vld [vmem:[%s2399_s6 + $0x570] sm:$0xff] }
  0xad   : > { %977 = vst [vmem:[%s2163_s29 + $0xd78] sm:$0xff] %v721_v44  ;;  %978 = vst [vmem:[%s2163_s29 + $0xd80] sm:$0xff] %v722_v45  ;;  %v724_v47 = vld [vmem:[%s2399_s6 + $0x578] sm:$0xff]  ;;  %v725_v48 = vld [vmem:[%s2399_s6 + $0x580] sm:$0xff] }
  0xae   : > { %979 = vst [vmem:[%s2163_s29 + $0xda0] sm:$0xff] %v723_v46  ;;  %v726_v49 = vld [vmem:[%s2399_s6 + $0x588] sm:$0xff]  ;;  %980 = vst [vmem:[%s2163_s29 + $0xda8] sm:$0xff] %v724_v47  ;;  %v727_v50 = vld [vmem:[%s2399_s6 + $0x590] sm:$0xff] }
  0xaf   : > { %981 = vst [vmem:[%s2163_s29 + $0xdc8] sm:$0xff] %v725_v48  ;;  %982 = vst [vmem:[%s2163_s29 + $0xdd0] sm:$0xff] %v726_v49  ;;  %v728_v51 = vld [vmem:[%s2399_s6 + $0x598] sm:$0xff]  ;;  %v729_v52 = vld [vmem:[%s2399_s6 + $0x5a0] sm:$0xff] }
  0xb0   : > { %983 = vst [vmem:[%s2163_s29 + $0xdf0] sm:$0xff] %v727_v50  ;;  %984 = vst [vmem:[%s2163_s29 + $0xdf8] sm:$0xff] %v728_v51  ;;  %v730_v53 = vld [vmem:[%s2399_s6 + $0x5a8] sm:$0xff]  ;;  %v731_v54 = vld [vmem:[%s2399_s6 + $0x5b0] sm:$0xff] }
  0xb1   : > { %985 = vst [vmem:[%s2163_s29 + $0xe18] sm:$0xff] %v729_v52  ;;  %v732_v55 = vld [vmem:[%s2399_s6 + $0x5b8] sm:$0xff]  ;;  %986 = vst [vmem:[%s2163_s29 + $0xe20] sm:$0xff] %v730_v53  ;;  %v733_v56 = vld [vmem:[%s2399_s6 + $0x5c0] sm:$0xff] }
  0xb2   : > { %987 = vst [vmem:[%s2163_s29 + $0xe40] sm:$0xff] %v731_v54  ;;  %988 = vst [vmem:[%s2163_s29 + $0xe48] sm:$0xff] %v732_v55  ;;  %v734_v57 = vld [vmem:[%s2399_s6 + $0x5c8] sm:$0xff]  ;;  %v735_v58 = vld [vmem:[%s2399_s6 + $0x5d0] sm:$0xff] }
  0xb3   : > { %989 = vst [vmem:[%s2163_s29 + $0xe68] sm:$0xff] %v733_v56  ;;  %990 = vst [vmem:[%s2163_s29 + $0xe70] sm:$0xff] %v734_v57  ;;  %v736_v59 = vld [vmem:[%s2399_s6 + $0x5d8] sm:$0xff]  ;;  %v737_v60 = vld [vmem:[%s2399_s6 + $0x5e0] sm:$0xff] }
  0xb4   : > { %991 = vst [vmem:[%s2163_s29 + $0xe90] sm:$0xff] %v735_v58  ;;  %v738_v61 = vld [vmem:[%s2399_s6 + $0x5e8] sm:$0xff]  ;;  %992 = vst [vmem:[%s2163_s29 + $0xe98] sm:$0xff] %v736_v59  ;;  %v739_v62 = vld [vmem:[%s2399_s6 + $0x5f0] sm:$0xff] }
  0xb5   : > { %993 = vst [vmem:[%s2163_s29 + $0xeb8] sm:$0xff] %v737_v60  ;;  %994 = vst [vmem:[%s2163_s29 + $0xec0] sm:$0xff] %v738_v61  ;;  %v740_v63 = vld [vmem:[%s2399_s6 + $0x5f8] sm:$0xff]  ;;  %v741_v0 = vld [vmem:[%s2399_s6 + $0x600] sm:$0xff] }
  0xb6   : > { %995 = vst [vmem:[%s2163_s29 + $0xee0] sm:$0xff] %v739_v62  ;;  %996 = vst [vmem:[%s2163_s29 + $0xee8] sm:$0xff] %v740_v63  ;;  %v742_v1 = vld [vmem:[%s2399_s6 + $0x608] sm:$0xff]  ;;  %v743_v2 = vld [vmem:[%s2399_s6 + $0x610] sm:$0xff] }
  0xb7   : > { %997 = vst [vmem:[%s2163_s29 + $0xf08] sm:$0xff] %v741_v0  ;;  %v744_v3 = vld [vmem:[%s2399_s6 + $0x618] sm:$0xff]  ;;  %998 = vst [vmem:[%s2163_s29 + $0xf10] sm:$0xff] %v742_v1  ;;  %v745_v4 = vld [vmem:[%s2399_s6 + $0x620] sm:$0xff] }
  0xb8   : > { %999 = vst [vmem:[%s2163_s29 + $0xf30] sm:$0xff] %v743_v2  ;;  %1000 = vst [vmem:[%s2163_s29 + $0xf38] sm:$0xff] %v744_v3  ;;  %v746_v5 = vld [vmem:[%s2399_s6 + $0x628] sm:$0xff]  ;;  %v747_v6 = vld [vmem:[%s2399_s6 + $0x630] sm:$0xff] }
  0xb9   : > { %1001 = vst [vmem:[%s2163_s29 + $0xf58] sm:$0xff] %v745_v4  ;;  %1002 = vst [vmem:[%s2163_s29 + $0xf60] sm:$0xff] %v746_v5  ;;  %v748_v7 = vld [vmem:[%s2399_s6 + $0x638] sm:$0xff]  ;;  %v749_v8 = vld [vmem:[%s2399_s6 + $0x640] sm:$0xff] }
  0xba   : > { %1003 = vst [vmem:[%s2163_s29 + $0xf80] sm:$0xff] %v747_v6  ;;  %v750_v9 = vld [vmem:[%s2399_s6 + $0x648] sm:$0xff]  ;;  %1004 = vst [vmem:[%s2163_s29 + $0xf88] sm:$0xff] %v748_v7  ;;  %v751_v10 = vld [vmem:[%s2399_s6 + $0x650] sm:$0xff] }
  0xbb   : > { %1005 = vst [vmem:[%s2163_s29 + $0xfa8] sm:$0xff] %v749_v8  ;;  %1006 = vst [vmem:[%s2163_s29 + $0xfb0] sm:$0xff] %v750_v9  ;;  %v752_v11 = vld [vmem:[%s2399_s6 + $0x658] sm:$0xff]  ;;  %v753_v12 = vld [vmem:[%s2399_s6 + $0x660] sm:$0xff] }
  0xbc   : > { %1007 = vst [vmem:[%s2163_s29 + $0xfd0] sm:$0xff] %v751_v10  ;;  %1008 = vst [vmem:[%s2163_s29 + $0xfd8] sm:$0xff] %v752_v11  ;;  %v754_v13 = vld [vmem:[%s2399_s6 + $0x668] sm:$0xff]  ;;  %v755_v14 = vld [vmem:[%s2399_s6 + $0x670] sm:$0xff] }
  0xbd   : > { %1009 = vst [vmem:[%s2163_s29 + $0xff8] sm:$0xff] %v753_v12  ;;  %v756_v15 = vld [vmem:[%s2399_s6 + $0x678] sm:$0xff]  ;;  %1010 = vst [vmem:[%s2163_s29 + $0x1000] sm:$0xff] %v754_v13  ;;  %v757_v16 = vld [vmem:[%s2399_s6 + $0x680] sm:$0xff] }
  0xbe   : > { %1011 = vst [vmem:[%s2163_s29 + $0x1020] sm:$0xff] %v755_v14  ;;  %1012 = vst [vmem:[%s2163_s29 + $0x1028] sm:$0xff] %v756_v15  ;;  %v758_v17 = vld [vmem:[%s2399_s6 + $0x688] sm:$0xff]  ;;  %v759_v18 = vld [vmem:[%s2399_s6 + $0x690] sm:$0xff] }
  0xbf   : > { %1013 = vst [vmem:[%s2163_s29 + $0x1048] sm:$0xff] %v757_v16  ;;  %1014 = vst [vmem:[%s2163_s29 + $0x1050] sm:$0xff] %v758_v17  ;;  %v760_v19 = vld [vmem:[%s2399_s6 + $0x698] sm:$0xff]  ;;  %v761_v20 = vld [vmem:[%s2399_s6 + $0x6a0] sm:$0xff] }
  0xc0   : > { %1015 = vst [vmem:[%s2163_s29 + $0x1070] sm:$0xff] %v759_v18  ;;  %v762_v21 = vld [vmem:[%s2399_s6 + $0x6a8] sm:$0xff]  ;;  %1016 = vst [vmem:[%s2163_s29 + $0x1078] sm:$0xff] %v760_v19  ;;  %v763_v22 = vld [vmem:[%s2399_s6 + $0x6b0] sm:$0xff] }
  0xc1   : > { %1017 = vst [vmem:[%s2163_s29 + $0x1098] sm:$0xff] %v761_v20  ;;  %1018 = vst [vmem:[%s2163_s29 + $0x10a0] sm:$0xff] %v762_v21  ;;  %v764_v23 = vld [vmem:[%s2399_s6 + $0x6b8] sm:$0xff]  ;;  %v765_v24 = vld [vmem:[%s2399_s6 + $0x6c0] sm:$0xff] }
  0xc2   : > { %1019 = vst [vmem:[%s2163_s29 + $0x10c0] sm:$0xff] %v763_v22  ;;  %1020 = vst [vmem:[%s2163_s29 + $0x10c8] sm:$0xff] %v764_v23  ;;  %v766_v25 = vld [vmem:[%s2399_s6 + $0x6c8] sm:$0xff]  ;;  %v767_v26 = vld [vmem:[%s2399_s6 + $0x6d0] sm:$0xff] }
  0xc3   : > { %1021 = vst [vmem:[%s2163_s29 + $0x10e8] sm:$0xff] %v765_v24  ;;  %v768_v27 = vld [vmem:[%s2399_s6 + $0x6d8] sm:$0xff]  ;;  %1022 = vst [vmem:[%s2163_s29 + $0x10f0] sm:$0xff] %v766_v25  ;;  %v769_v28 = vld [vmem:[%s2399_s6 + $0x6e0] sm:$0xff] }
  0xc4   : > { %1023 = vst [vmem:[%s2163_s29 + $0x1110] sm:$0xff] %v767_v26  ;;  %1024 = vst [vmem:[%s2163_s29 + $0x1118] sm:$0xff] %v768_v27  ;;  %v770_v29 = vld [vmem:[%s2399_s6 + $0x6e8] sm:$0xff]  ;;  %v771_v30 = vld [vmem:[%s2399_s6 + $0x6f0] sm:$0xff] }
  0xc5   : > { %1025 = vst [vmem:[%s2163_s29 + $0x1138] sm:$0xff] %v769_v28  ;;  %1026 = vst [vmem:[%s2163_s29 + $0x1140] sm:$0xff] %v770_v29  ;;  %v772_v31 = vld [vmem:[%s2399_s6 + $0x6f8] sm:$0xff]  ;;  %v773_v32 = vld [vmem:[%s2399_s6 + $0x700] sm:$0xff] }
  0xc6   : > { %1027 = vst [vmem:[%s2163_s29 + $0x1160] sm:$0xff] %v771_v30  ;;  %v774_v33 = vld [vmem:[%s2399_s6 + $0x708] sm:$0xff]  ;;  %1028 = vst [vmem:[%s2163_s29 + $0x1168] sm:$0xff] %v772_v31  ;;  %v775_v34 = vld [vmem:[%s2399_s6 + $0x710] sm:$0xff] }
  0xc7   : > { %1029 = vst [vmem:[%s2163_s29 + $0x1188] sm:$0xff] %v773_v32  ;;  %1030 = vst [vmem:[%s2163_s29 + $0x1190] sm:$0xff] %v774_v33  ;;  %v776_v35 = vld [vmem:[%s2399_s6 + $0x718] sm:$0xff]  ;;  %v777_v36 = vld [vmem:[%s2399_s6 + $0x720] sm:$0xff] }
  0xc8   : > { %1031 = vst [vmem:[%s2163_s29 + $0x11b0] sm:$0xff] %v775_v34  ;;  %1032 = vst [vmem:[%s2163_s29 + $0x11b8] sm:$0xff] %v776_v35  ;;  %v778_v37 = vld [vmem:[%s2399_s6 + $0x728] sm:$0xff]  ;;  %v779_v38 = vld [vmem:[%s2399_s6 + $0x730] sm:$0xff] }
  0xc9   : > { %1033 = vst [vmem:[%s2163_s29 + $0x11d8] sm:$0xff] %v777_v36  ;;  %v780_v39 = vld [vmem:[%s2399_s6 + $0x738] sm:$0xff]  ;;  %1034 = vst [vmem:[%s2163_s29 + $0x11e0] sm:$0xff] %v778_v37  ;;  %v781_v40 = vld [vmem:[%s2399_s6 + $0x740] sm:$0xff] }
  0xca   : > { %1035 = vst [vmem:[%s2163_s29 + $0x1200] sm:$0xff] %v779_v38  ;;  %1036 = vst [vmem:[%s2163_s29 + $0x1208] sm:$0xff] %v780_v39  ;;  %v782_v41 = vld [vmem:[%s2399_s6 + $0x748] sm:$0xff]  ;;  %v783_v42 = vld [vmem:[%s2399_s6 + $0x750] sm:$0xff] }
  0xcb   : > { %1037 = vst [vmem:[%s2163_s29 + $0x1228] sm:$0xff] %v781_v40  ;;  %1038 = vst [vmem:[%s2163_s29 + $0x1230] sm:$0xff] %v782_v41  ;;  %v784_v43 = vld [vmem:[%s2399_s6 + $0x758] sm:$0xff]  ;;  %v785_v44 = vld [vmem:[%s2399_s6 + $0x760] sm:$0xff] }
  0xcc   : > { %1039 = vst [vmem:[%s2163_s29 + $0x1250] sm:$0xff] %v783_v42  ;;  %v786_v45 = vld [vmem:[%s2399_s6 + $0x768] sm:$0xff]  ;;  %1040 = vst [vmem:[%s2163_s29 + $0x1258] sm:$0xff] %v784_v43  ;;  %v787_v46 = vld [vmem:[%s2399_s6 + $0x770] sm:$0xff] }
  0xcd   : > { %1041 = vst [vmem:[%s2163_s29 + $0x1278] sm:$0xff] %v785_v44  ;;  %1042 = vst [vmem:[%s2163_s29 + $0x1280] sm:$0xff] %v786_v45  ;;  %v788_v47 = vld [vmem:[%s2399_s6 + $0x778] sm:$0xff]  ;;  %v789_v48 = vld [vmem:[%s2399_s6 + $0x780] sm:$0xff] }
  0xce   : > { %1043 = vst [vmem:[%s2163_s29 + $0x12a0] sm:$0xff] %v787_v46  ;;  %1044 = vst [vmem:[%s2163_s29 + $0x12a8] sm:$0xff] %v788_v47  ;;  %v790_v49 = vld [vmem:[%s2399_s6 + $0x788] sm:$0xff]  ;;  %v791_v50 = vld [vmem:[%s2399_s6 + $0x790] sm:$0xff] }
  0xcf   : > { %1045 = vst [vmem:[%s2163_s29 + $0x12c8] sm:$0xff] %v789_v48  ;;  %v792_v51 = vld [vmem:[%s2399_s6 + $0x798] sm:$0xff]  ;;  %1046 = vst [vmem:[%s2163_s29 + $0x12d0] sm:$0xff] %v790_v49  ;;  %v793_v52 = vld [vmem:[%s2399_s6 + $0x7a0] sm:$0xff] }
  0xd0   : > { %1047 = vst [vmem:[%s2163_s29 + $0x12f0] sm:$0xff] %v791_v50  ;;  %1048 = vst [vmem:[%s2163_s29 + $0x12f8] sm:$0xff] %v792_v51  ;;  %v794_v53 = vld [vmem:[%s2399_s6 + $0x7a8] sm:$0xff]  ;;  %v795_v54 = vld [vmem:[%s2399_s6 + $0x7b0] sm:$0xff] }
  0xd1   : > { %1049 = vst [vmem:[%s2163_s29 + $0x1318] sm:$0xff] %v793_v52  ;;  %1050 = vst [vmem:[%s2163_s29 + $0x1320] sm:$0xff] %v794_v53  ;;  %v796_v55 = vld [vmem:[%s2399_s6 + $0x7b8] sm:$0xff]  ;;  %v797_v56 = vld [vmem:[%s2399_s6 + $0x7c0] sm:$0xff] }
  0xd2   : > { %1051 = vst [vmem:[%s2163_s29 + $0x1340] sm:$0xff] %v795_v54  ;;  %v798_v57 = vld [vmem:[%s2399_s6 + $0x7c8] sm:$0xff]  ;;  %1052 = vst [vmem:[%s2163_s29 + $0x1348] sm:$0xff] %v796_v55  ;;  %v799_v58 = vld [vmem:[%s2399_s6 + $0x7d0] sm:$0xff] }
  0xd3   : > { %1053 = vst [vmem:[%s2163_s29 + $0x1368] sm:$0xff] %v797_v56  ;;  %1054 = vst [vmem:[%s2163_s29 + $0x1370] sm:$0xff] %v798_v57  ;;  %v800_v59 = vld [vmem:[%s2399_s6 + $0x7d8] sm:$0xff]  ;;  %v801_v60 = vld [vmem:[%s2399_s6 + $0x7e0] sm:$0xff] }
  0xd4   : > { %1055 = vst [vmem:[%s2163_s29 + $0x1390] sm:$0xff] %v799_v58  ;;  %1056 = vst [vmem:[%s2163_s29 + $0x1398] sm:$0xff] %v800_v59  ;;  %v802_v61 = vld [vmem:[%s2399_s6 + $0x7e8] sm:$0xff]  ;;  %v803_v62 = vld [vmem:[%s2399_s6 + $0x7f0] sm:$0xff] }
  0xd5   : > { %1057 = vst [vmem:[%s2163_s29 + $0x13b8] sm:$0xff] %v801_v60  ;;  %v804_v63 = vld [vmem:[%s2399_s6 + $0x7f8] sm:$0xff]  ;;  %1058 = vst [vmem:[%s2163_s29 + $0x13c0] sm:$0xff] %v802_v61  ;;  %v1061_v0 = vld [vmem:[%s2922_s9] sm:$0xff] }
  0xd6   : > { %1059 = vst [vmem:[%s2163_s29 + $0x13e0] sm:$0xff] %v803_v62  ;;  %1060 = vst [vmem:[%s2163_s29 + $0x13e8] sm:$0xff] %v804_v63  ;;  %v1062_v1 = vld [vmem:[%s2922_s9 + $0x8] sm:$0xff]  ;;  %v1063_v2 = vld [vmem:[%s2922_s9 + $0x10] sm:$0xff] }
  0xd7   : > { %1317 = vst [vmem:[%s2163_s29 + $0x18] sm:$0xff] %v1061_v0  ;;  %1319 = vst.msk [vmem:[%s2163_s29 + $0x20] sm:$0xff] %vm1318_vm0, %v1062_v1  ;;  %v1064_v3 = vld [vmem:[%s2922_s9 + $0x18] sm:$0xff]  ;;  %v1065_v4 = vld [vmem:[%s2922_s9 + $0x20] sm:$0xff] }
  0xd8   : > { %1320 = vst [vmem:[%s2163_s29 + $0x40] sm:$0xff] %v1063_v2  ;;  %v1066_v5 = vld [vmem:[%s2922_s9 + $0x28] sm:$0xff]  ;;  %1321 = vst.msk [vmem:[%s2163_s29 + $0x48] sm:$0xff] %vm1318_vm0, %v1064_v3  ;;  %v1067_v6 = vld [vmem:[%s2922_s9 + $0x30] sm:$0xff] }
  0xd9   : > { %1322 = vst [vmem:[%s2163_s29 + $0x68] sm:$0xff] %v1065_v4  ;;  %1323 = vst.msk [vmem:[%s2163_s29 + $0x70] sm:$0xff] %vm1318_vm0, %v1066_v5  ;;  %v1068_v7 = vld [vmem:[%s2922_s9 + $0x38] sm:$0xff]  ;;  %v1069_v8 = vld [vmem:[%s2922_s9 + $0x40] sm:$0xff] }
  0xda   : > { %1324 = vst [vmem:[%s2163_s29 + $0x90] sm:$0xff] %v1067_v6  ;;  %1325 = vst.msk [vmem:[%s2163_s29 + $0x98] sm:$0xff] %vm1318_vm0, %v1068_v7  ;;  %v1070_v9 = vld [vmem:[%s2922_s9 + $0x48] sm:$0xff]  ;;  %v1071_v10 = vld [vmem:[%s2922_s9 + $0x50] sm:$0xff] }
  0xdb   : > { %1326 = vst [vmem:[%s2163_s29 + $0xb8] sm:$0xff] %v1069_v8  ;;  %v1072_v11 = vld [vmem:[%s2922_s9 + $0x58] sm:$0xff]  ;;  %1327 = vst.msk [vmem:[%s2163_s29 + $0xc0] sm:$0xff] %vm1318_vm0, %v1070_v9  ;;  %v1073_v12 = vld [vmem:[%s2922_s9 + $0x60] sm:$0xff] }
  0xdc   : > { %1328 = vst [vmem:[%s2163_s29 + $0xe0] sm:$0xff] %v1071_v10  ;;  %1329 = vst.msk [vmem:[%s2163_s29 + $0xe8] sm:$0xff] %vm1318_vm0, %v1072_v11  ;;  %v1074_v13 = vld [vmem:[%s2922_s9 + $0x68] sm:$0xff]  ;;  %v1075_v14 = vld [vmem:[%s2922_s9 + $0x70] sm:$0xff] }
  0xdd   : > { %1330 = vst [vmem:[%s2163_s29 + $0x108] sm:$0xff] %v1073_v12  ;;  %1331 = vst.msk [vmem:[%s2163_s29 + $0x110] sm:$0xff] %vm1318_vm0, %v1074_v13  ;;  %v1076_v15 = vld [vmem:[%s2922_s9 + $0x78] sm:$0xff]  ;;  %v1077_v16 = vld [vmem:[%s2922_s9 + $0x80] sm:$0xff] }
  0xde   : > { %1332 = vst [vmem:[%s2163_s29 + $0x130] sm:$0xff] %v1075_v14  ;;  %v1078_v17 = vld [vmem:[%s2922_s9 + $0x88] sm:$0xff]  ;;  %1333 = vst.msk [vmem:[%s2163_s29 + $0x138] sm:$0xff] %vm1318_vm0, %v1076_v15  ;;  %v1079_v18 = vld [vmem:[%s2922_s9 + $0x90] sm:$0xff] }
  0xdf   : > { %1334 = vst [vmem:[%s2163_s29 + $0x158] sm:$0xff] %v1077_v16  ;;  %1335 = vst.msk [vmem:[%s2163_s29 + $0x160] sm:$0xff] %vm1318_vm0, %v1078_v17  ;;  %v1080_v19 = vld [vmem:[%s2922_s9 + $0x98] sm:$0xff]  ;;  %v1081_v20 = vld [vmem:[%s2922_s9 + $0xa0] sm:$0xff] }
  0xe0   : > { %1336 = vst [vmem:[%s2163_s29 + $0x180] sm:$0xff] %v1079_v18  ;;  %1337 = vst.msk [vmem:[%s2163_s29 + $0x188] sm:$0xff] %vm1318_vm0, %v1080_v19  ;;  %v1082_v21 = vld [vmem:[%s2922_s9 + $0xa8] sm:$0xff]  ;;  %v1083_v22 = vld [vmem:[%s2922_s9 + $0xb0] sm:$0xff] }
  0xe1   : > { %1338 = vst [vmem:[%s2163_s29 + $0x1a8] sm:$0xff] %v1081_v20  ;;  %v1084_v23 = vld [vmem:[%s2922_s9 + $0xb8] sm:$0xff]  ;;  %1339 = vst.msk [vmem:[%s2163_s29 + $0x1b0] sm:$0xff] %vm1318_vm0, %v1082_v21  ;;  %v1085_v24 = vld [vmem:[%s2922_s9 + $0xc0] sm:$0xff] }
  0xe2   : > { %1340 = vst [vmem:[%s2163_s29 + $0x1d0] sm:$0xff] %v1083_v22  ;;  %1341 = vst.msk [vmem:[%s2163_s29 + $0x1d8] sm:$0xff] %vm1318_vm0, %v1084_v23  ;;  %v1086_v25 = vld [vmem:[%s2922_s9 + $0xc8] sm:$0xff]  ;;  %v1087_v26 = vld [vmem:[%s2922_s9 + $0xd0] sm:$0xff] }
  0xe3   : > { %1342 = vst [vmem:[%s2163_s29 + $0x1f8] sm:$0xff] %v1085_v24  ;;  %1343 = vst.msk [vmem:[%s2163_s29 + $0x200] sm:$0xff] %vm1318_vm0, %v1086_v25  ;;  %v1088_v27 = vld [vmem:[%s2922_s9 + $0xd8] sm:$0xff]  ;;  %v1089_v28 = vld [vmem:[%s2922_s9 + $0xe0] sm:$0xff] }
  0xe4   : > { %1344 = vst [vmem:[%s2163_s29 + $0x220] sm:$0xff] %v1087_v26  ;;  %v1090_v29 = vld [vmem:[%s2922_s9 + $0xe8] sm:$0xff]  ;;  %1345 = vst.msk [vmem:[%s2163_s29 + $0x228] sm:$0xff] %vm1318_vm0, %v1088_v27  ;;  %v1091_v30 = vld [vmem:[%s2922_s9 + $0xf0] sm:$0xff] }
  0xe5   : > { %1346 = vst [vmem:[%s2163_s29 + $0x248] sm:$0xff] %v1089_v28  ;;  %1347 = vst.msk [vmem:[%s2163_s29 + $0x250] sm:$0xff] %vm1318_vm0, %v1090_v29  ;;  %v1092_v31 = vld [vmem:[%s2922_s9 + $0xf8] sm:$0xff]  ;;  %v1093_v32 = vld [vmem:[%s2922_s9 + $0x100] sm:$0xff] }
  0xe6   : > { %1348 = vst [vmem:[%s2163_s29 + $0x270] sm:$0xff] %v1091_v30  ;;  %1349 = vst.msk [vmem:[%s2163_s29 + $0x278] sm:$0xff] %vm1318_vm0, %v1092_v31  ;;  %v1094_v33 = vld [vmem:[%s2922_s9 + $0x108] sm:$0xff]  ;;  %v1095_v34 = vld [vmem:[%s2922_s9 + $0x110] sm:$0xff] }
  0xe7   : > { %1350 = vst [vmem:[%s2163_s29 + $0x298] sm:$0xff] %v1093_v32  ;;  %v1096_v35 = vld [vmem:[%s2922_s9 + $0x118] sm:$0xff]  ;;  %1351 = vst.msk [vmem:[%s2163_s29 + $0x2a0] sm:$0xff] %vm1318_vm0, %v1094_v33  ;;  %v1097_v36 = vld [vmem:[%s2922_s9 + $0x120] sm:$0xff] }
  0xe8   : > { %1352 = vst [vmem:[%s2163_s29 + $0x2c0] sm:$0xff] %v1095_v34  ;;  %1353 = vst.msk [vmem:[%s2163_s29 + $0x2c8] sm:$0xff] %vm1318_vm0, %v1096_v35  ;;  %v1098_v37 = vld [vmem:[%s2922_s9 + $0x128] sm:$0xff]  ;;  %v1099_v38 = vld [vmem:[%s2922_s9 + $0x130] sm:$0xff] }
  0xe9   : > { %1354 = vst [vmem:[%s2163_s29 + $0x2e8] sm:$0xff] %v1097_v36  ;;  %1355 = vst.msk [vmem:[%s2163_s29 + $0x2f0] sm:$0xff] %vm1318_vm0, %v1098_v37  ;;  %v1100_v39 = vld [vmem:[%s2922_s9 + $0x138] sm:$0xff]  ;;  %v1101_v40 = vld [vmem:[%s2922_s9 + $0x140] sm:$0xff] }
  0xea   : > { %1356 = vst [vmem:[%s2163_s29 + $0x310] sm:$0xff] %v1099_v38  ;;  %v1102_v41 = vld [vmem:[%s2922_s9 + $0x148] sm:$0xff]  ;;  %1357 = vst.msk [vmem:[%s2163_s29 + $0x318] sm:$0xff] %vm1318_vm0, %v1100_v39  ;;  %v1103_v42 = vld [vmem:[%s2922_s9 + $0x150] sm:$0xff] }
  0xeb   : > { %1358 = vst [vmem:[%s2163_s29 + $0x338] sm:$0xff] %v1101_v40  ;;  %1359 = vst.msk [vmem:[%s2163_s29 + $0x340] sm:$0xff] %vm1318_vm0, %v1102_v41  ;;  %v1104_v43 = vld [vmem:[%s2922_s9 + $0x158] sm:$0xff]  ;;  %v1105_v44 = vld [vmem:[%s2922_s9 + $0x160] sm:$0xff] }
  0xec   : > { %1360 = vst [vmem:[%s2163_s29 + $0x360] sm:$0xff] %v1103_v42  ;;  %1361 = vst.msk [vmem:[%s2163_s29 + $0x368] sm:$0xff] %vm1318_vm0, %v1104_v43  ;;  %v1106_v45 = vld [vmem:[%s2922_s9 + $0x168] sm:$0xff]  ;;  %v1107_v46 = vld [vmem:[%s2922_s9 + $0x170] sm:$0xff] }
  0xed   : > { %1362 = vst [vmem:[%s2163_s29 + $0x388] sm:$0xff] %v1105_v44  ;;  %v1108_v47 = vld [vmem:[%s2922_s9 + $0x178] sm:$0xff]  ;;  %1363 = vst.msk [vmem:[%s2163_s29 + $0x390] sm:$0xff] %vm1318_vm0, %v1106_v45  ;;  %v1109_v48 = vld [vmem:[%s2922_s9 + $0x180] sm:$0xff] }
  0xee   : > { %1364 = vst [vmem:[%s2163_s29 + $0x3b0] sm:$0xff] %v1107_v46  ;;  %1365 = vst.msk [vmem:[%s2163_s29 + $0x3b8] sm:$0xff] %vm1318_vm0, %v1108_v47  ;;  %v1110_v49 = vld [vmem:[%s2922_s9 + $0x188] sm:$0xff]  ;;  %v1111_v50 = vld [vmem:[%s2922_s9 + $0x190] sm:$0xff] }
  0xef   : > { %1366 = vst [vmem:[%s2163_s29 + $0x3d8] sm:$0xff] %v1109_v48  ;;  %1367 = vst.msk [vmem:[%s2163_s29 + $0x3e0] sm:$0xff] %vm1318_vm0, %v1110_v49  ;;  %v1112_v51 = vld [vmem:[%s2922_s9 + $0x198] sm:$0xff]  ;;  %v1113_v52 = vld [vmem:[%s2922_s9 + $0x1a0] sm:$0xff] }
  0xf0   : > { %1368 = vst [vmem:[%s2163_s29 + $0x400] sm:$0xff] %v1111_v50  ;;  %v1114_v53 = vld [vmem:[%s2922_s9 + $0x1a8] sm:$0xff]  ;;  %1369 = vst.msk [vmem:[%s2163_s29 + $0x408] sm:$0xff] %vm1318_vm0, %v1112_v51  ;;  %v1115_v54 = vld [vmem:[%s2922_s9 + $0x1b0] sm:$0xff] }
  0xf1   : > { %1370 = vst [vmem:[%s2163_s29 + $0x428] sm:$0xff] %v1113_v52  ;;  %1371 = vst.msk [vmem:[%s2163_s29 + $0x430] sm:$0xff] %vm1318_vm0, %v1114_v53  ;;  %v1116_v55 = vld [vmem:[%s2922_s9 + $0x1b8] sm:$0xff]  ;;  %v1117_v56 = vld [vmem:[%s2922_s9 + $0x1c0] sm:$0xff] }
  0xf2   : > { %1372 = vst [vmem:[%s2163_s29 + $0x450] sm:$0xff] %v1115_v54  ;;  %1373 = vst.msk [vmem:[%s2163_s29 + $0x458] sm:$0xff] %vm1318_vm0, %v1116_v55  ;;  %v1118_v57 = vld [vmem:[%s2922_s9 + $0x1c8] sm:$0xff]  ;;  %v1119_v58 = vld [vmem:[%s2922_s9 + $0x1d0] sm:$0xff] }
  0xf3   : > { %1374 = vst [vmem:[%s2163_s29 + $0x478] sm:$0xff] %v1117_v56  ;;  %v1120_v59 = vld [vmem:[%s2922_s9 + $0x1d8] sm:$0xff]  ;;  %1375 = vst.msk [vmem:[%s2163_s29 + $0x480] sm:$0xff] %vm1318_vm0, %v1118_v57  ;;  %v1121_v60 = vld [vmem:[%s2922_s9 + $0x1e0] sm:$0xff] }
  0xf4   : > { %1376 = vst [vmem:[%s2163_s29 + $0x4a0] sm:$0xff] %v1119_v58  ;;  %1377 = vst.msk [vmem:[%s2163_s29 + $0x4a8] sm:$0xff] %vm1318_vm0, %v1120_v59  ;;  %v1122_v61 = vld [vmem:[%s2922_s9 + $0x1e8] sm:$0xff]  ;;  %v1123_v62 = vld [vmem:[%s2922_s9 + $0x1f0] sm:$0xff] }
  0xf5   : > { %1378 = vst [vmem:[%s2163_s29 + $0x4c8] sm:$0xff] %v1121_v60  ;;  %1379 = vst.msk [vmem:[%s2163_s29 + $0x4d0] sm:$0xff] %vm1318_vm0, %v1122_v61  ;;  %v1124_v63 = vld [vmem:[%s2922_s9 + $0x1f8] sm:$0xff]  ;;  %v1125_v0 = vld [vmem:[%s2922_s9 + $0x200] sm:$0xff] }
  0xf6   : > { %1380 = vst [vmem:[%s2163_s29 + $0x4f0] sm:$0xff] %v1123_v62  ;;  %v1126_v1 = vld [vmem:[%s2922_s9 + $0x208] sm:$0xff]  ;;  %1381 = vst.msk [vmem:[%s2163_s29 + $0x4f8] sm:$0xff] %vm1318_vm0, %v1124_v63  ;;  %v1127_v2 = vld [vmem:[%s2922_s9 + $0x210] sm:$0xff] }
  0xf7   : > { %1382 = vst [vmem:[%s2163_s29 + $0x518] sm:$0xff] %v1125_v0  ;;  %1383 = vst.msk [vmem:[%s2163_s29 + $0x520] sm:$0xff] %vm1318_vm0, %v1126_v1  ;;  %v1128_v3 = vld [vmem:[%s2922_s9 + $0x218] sm:$0xff]  ;;  %v1129_v4 = vld [vmem:[%s2922_s9 + $0x220] sm:$0xff] }
  0xf8   : > { %1384 = vst [vmem:[%s2163_s29 + $0x540] sm:$0xff] %v1127_v2  ;;  %1385 = vst.msk [vmem:[%s2163_s29 + $0x548] sm:$0xff] %vm1318_vm0, %v1128_v3  ;;  %v1130_v5 = vld [vmem:[%s2922_s9 + $0x228] sm:$0xff]  ;;  %v1131_v6 = vld [vmem:[%s2922_s9 + $0x230] sm:$0xff] }
  0xf9   : > { %1386 = vst [vmem:[%s2163_s29 + $0x568] sm:$0xff] %v1129_v4  ;;  %v1132_v7 = vld [vmem:[%s2922_s9 + $0x238] sm:$0xff]  ;;  %1387 = vst.msk [vmem:[%s2163_s29 + $0x570] sm:$0xff] %vm1318_vm0, %v1130_v5  ;;  %v1133_v8 = vld [vmem:[%s2922_s9 + $0x240] sm:$0xff] }
  0xfa   : > { %1388 = vst [vmem:[%s2163_s29 + $0x590] sm:$0xff] %v1131_v6  ;;  %1389 = vst.msk [vmem:[%s2163_s29 + $0x598] sm:$0xff] %vm1318_vm0, %v1132_v7  ;;  %v1134_v9 = vld [vmem:[%s2922_s9 + $0x248] sm:$0xff]  ;;  %v1135_v10 = vld [vmem:[%s2922_s9 + $0x250] sm:$0xff] }
  0xfb   : > { %1390 = vst [vmem:[%s2163_s29 + $0x5b8] sm:$0xff] %v1133_v8  ;;  %1391 = vst.msk [vmem:[%s2163_s29 + $0x5c0] sm:$0xff] %vm1318_vm0, %v1134_v9  ;;  %v1136_v11 = vld [vmem:[%s2922_s9 + $0x258] sm:$0xff]  ;;  %v1137_v12 = vld [vmem:[%s2922_s9 + $0x260] sm:$0xff] }
  0xfc   : > { %1392 = vst [vmem:[%s2163_s29 + $0x5e0] sm:$0xff] %v1135_v10  ;;  %v1138_v13 = vld [vmem:[%s2922_s9 + $0x268] sm:$0xff]  ;;  %1393 = vst.msk [vmem:[%s2163_s29 + $0x5e8] sm:$0xff] %vm1318_vm0, %v1136_v11  ;;  %v1139_v14 = vld [vmem:[%s2922_s9 + $0x270] sm:$0xff] }
  0xfd   : > { %1394 = vst [vmem:[%s2163_s29 + $0x608] sm:$0xff] %v1137_v12  ;;  %1395 = vst.msk [vmem:[%s2163_s29 + $0x610] sm:$0xff] %vm1318_vm0, %v1138_v13  ;;  %v1140_v15 = vld [vmem:[%s2922_s9 + $0x278] sm:$0xff]  ;;  %v1141_v16 = vld [vmem:[%s2922_s9 + $0x280] sm:$0xff] }
  0xfe   : > { %1396 = vst [vmem:[%s2163_s29 + $0x630] sm:$0xff] %v1139_v14  ;;  %1397 = vst.msk [vmem:[%s2163_s29 + $0x638] sm:$0xff] %vm1318_vm0, %v1140_v15  ;;  %v1142_v17 = vld [vmem:[%s2922_s9 + $0x288] sm:$0xff]  ;;  %v1143_v18 = vld [vmem:[%s2922_s9 + $0x290] sm:$0xff] }
  0xff   : > { %1398 = vst [vmem:[%s2163_s29 + $0x658] sm:$0xff] %v1141_v16  ;;  %v1144_v19 = vld [vmem:[%s2922_s9 + $0x298] sm:$0xff]  ;;  %1399 = vst.msk [vmem:[%s2163_s29 + $0x660] sm:$0xff] %vm1318_vm0, %v1142_v17  ;;  %v1145_v20 = vld [vmem:[%s2922_s9 + $0x2a0] sm:$0xff] }
 0x100   : > { %1400 = vst [vmem:[%s2163_s29 + $0x680] sm:$0xff] %v1143_v18  ;;  %1401 = vst.msk [vmem:[%s2163_s29 + $0x688] sm:$0xff] %vm1318_vm0, %v1144_v19  ;;  %v1146_v21 = vld [vmem:[%s2922_s9 + $0x2a8] sm:$0xff]  ;;  %v1147_v22 = vld [vmem:[%s2922_s9 + $0x2b0] sm:$0xff] }
 0x101   : > { %1402 = vst [vmem:[%s2163_s29 + $0x6a8] sm:$0xff] %v1145_v20  ;;  %1403 = vst.msk [vmem:[%s2163_s29 + $0x6b0] sm:$0xff] %vm1318_vm0, %v1146_v21  ;;  %v1148_v23 = vld [vmem:[%s2922_s9 + $0x2b8] sm:$0xff]  ;;  %v1149_v24 = vld [vmem:[%s2922_s9 + $0x2c0] sm:$0xff] }
 0x102   : > { %1404 = vst [vmem:[%s2163_s29 + $0x6d0] sm:$0xff] %v1147_v22  ;;  %v1150_v25 = vld [vmem:[%s2922_s9 + $0x2c8] sm:$0xff]  ;;  %1405 = vst.msk [vmem:[%s2163_s29 + $0x6d8] sm:$0xff] %vm1318_vm0, %v1148_v23  ;;  %v1151_v26 = vld [vmem:[%s2922_s9 + $0x2d0] sm:$0xff] }
 0x103   : > { %1406 = vst [vmem:[%s2163_s29 + $0x6f8] sm:$0xff] %v1149_v24  ;;  %1407 = vst.msk [vmem:[%s2163_s29 + $0x700] sm:$0xff] %vm1318_vm0, %v1150_v25  ;;  %v1152_v27 = vld [vmem:[%s2922_s9 + $0x2d8] sm:$0xff]  ;;  %v1153_v28 = vld [vmem:[%s2922_s9 + $0x2e0] sm:$0xff] }
 0x104   : > { %1408 = vst [vmem:[%s2163_s29 + $0x720] sm:$0xff] %v1151_v26  ;;  %1409 = vst.msk [vmem:[%s2163_s29 + $0x728] sm:$0xff] %vm1318_vm0, %v1152_v27  ;;  %v1154_v29 = vld [vmem:[%s2922_s9 + $0x2e8] sm:$0xff]  ;;  %v1155_v30 = vld [vmem:[%s2922_s9 + $0x2f0] sm:$0xff] }
 0x105   : > { %1410 = vst [vmem:[%s2163_s29 + $0x748] sm:$0xff] %v1153_v28  ;;  %v1156_v31 = vld [vmem:[%s2922_s9 + $0x2f8] sm:$0xff]  ;;  %1411 = vst.msk [vmem:[%s2163_s29 + $0x750] sm:$0xff] %vm1318_vm0, %v1154_v29  ;;  %v1157_v32 = vld [vmem:[%s2922_s9 + $0x300] sm:$0xff] }
 0x106   : > { %1412 = vst [vmem:[%s2163_s29 + $0x770] sm:$0xff] %v1155_v30  ;;  %1413 = vst.msk [vmem:[%s2163_s29 + $0x778] sm:$0xff] %vm1318_vm0, %v1156_v31  ;;  %v1158_v33 = vld [vmem:[%s2922_s9 + $0x308] sm:$0xff]  ;;  %v1159_v34 = vld [vmem:[%s2922_s9 + $0x310] sm:$0xff] }
 0x107   : > { %1414 = vst [vmem:[%s2163_s29 + $0x798] sm:$0xff] %v1157_v32  ;;  %1415 = vst.msk [vmem:[%s2163_s29 + $0x7a0] sm:$0xff] %vm1318_vm0, %v1158_v33  ;;  %v1160_v35 = vld [vmem:[%s2922_s9 + $0x318] sm:$0xff]  ;;  %v1161_v36 = vld [vmem:[%s2922_s9 + $0x320] sm:$0xff] }
 0x108   : > { %1416 = vst [vmem:[%s2163_s29 + $0x7c0] sm:$0xff] %v1159_v34  ;;  %v1162_v37 = vld [vmem:[%s2922_s9 + $0x328] sm:$0xff]  ;;  %1417 = vst.msk [vmem:[%s2163_s29 + $0x7c8] sm:$0xff] %vm1318_vm0, %v1160_v35  ;;  %v1163_v38 = vld [vmem:[%s2922_s9 + $0x330] sm:$0xff] }
 0x109   : > { %1418 = vst [vmem:[%s2163_s29 + $0x7e8] sm:$0xff] %v1161_v36  ;;  %1419 = vst.msk [vmem:[%s2163_s29 + $0x7f0] sm:$0xff] %vm1318_vm0, %v1162_v37  ;;  %v1164_v39 = vld [vmem:[%s2922_s9 + $0x338] sm:$0xff]  ;;  %v1165_v40 = vld [vmem:[%s2922_s9 + $0x340] sm:$0xff] }
 0x10a   : > { %1420 = vst [vmem:[%s2163_s29 + $0x810] sm:$0xff] %v1163_v38  ;;  %1421 = vst.msk [vmem:[%s2163_s29 + $0x818] sm:$0xff] %vm1318_vm0, %v1164_v39  ;;  %v1166_v41 = vld [vmem:[%s2922_s9 + $0x348] sm:$0xff]  ;;  %v1167_v42 = vld [vmem:[%s2922_s9 + $0x350] sm:$0xff] }
 0x10b   : > { %1422 = vst [vmem:[%s2163_s29 + $0x838] sm:$0xff] %v1165_v40  ;;  %v1168_v43 = vld [vmem:[%s2922_s9 + $0x358] sm:$0xff]  ;;  %1423 = vst.msk [vmem:[%s2163_s29 + $0x840] sm:$0xff] %vm1318_vm0, %v1166_v41  ;;  %v1169_v44 = vld [vmem:[%s2922_s9 + $0x360] sm:$0xff] }
 0x10c   : > { %1424 = vst [vmem:[%s2163_s29 + $0x860] sm:$0xff] %v1167_v42  ;;  %1425 = vst.msk [vmem:[%s2163_s29 + $0x868] sm:$0xff] %vm1318_vm0, %v1168_v43  ;;  %v1170_v45 = vld [vmem:[%s2922_s9 + $0x368] sm:$0xff]  ;;  %v1171_v46 = vld [vmem:[%s2922_s9 + $0x370] sm:$0xff] }
 0x10d   : > { %1426 = vst [vmem:[%s2163_s29 + $0x888] sm:$0xff] %v1169_v44  ;;  %1427 = vst.msk [vmem:[%s2163_s29 + $0x890] sm:$0xff] %vm1318_vm0, %v1170_v45  ;;  %v1172_v47 = vld [vmem:[%s2922_s9 + $0x378] sm:$0xff]  ;;  %v1173_v48 = vld [vmem:[%s2922_s9 + $0x380] sm:$0xff] }
 0x10e   : > { %1428 = vst [vmem:[%s2163_s29 + $0x8b0] sm:$0xff] %v1171_v46  ;;  %v1174_v49 = vld [vmem:[%s2922_s9 + $0x388] sm:$0xff]  ;;  %1429 = vst.msk [vmem:[%s2163_s29 + $0x8b8] sm:$0xff] %vm1318_vm0, %v1172_v47  ;;  %v1175_v50 = vld [vmem:[%s2922_s9 + $0x390] sm:$0xff] }
 0x10f   : > { %1430 = vst [vmem:[%s2163_s29 + $0x8d8] sm:$0xff] %v1173_v48  ;;  %1431 = vst.msk [vmem:[%s2163_s29 + $0x8e0] sm:$0xff] %vm1318_vm0, %v1174_v49  ;;  %v1176_v51 = vld [vmem:[%s2922_s9 + $0x398] sm:$0xff]  ;;  %v1177_v52 = vld [vmem:[%s2922_s9 + $0x3a0] sm:$0xff] }
 0x110   : > { %1432 = vst [vmem:[%s2163_s29 + $0x900] sm:$0xff] %v1175_v50  ;;  %1433 = vst.msk [vmem:[%s2163_s29 + $0x908] sm:$0xff] %vm1318_vm0, %v1176_v51  ;;  %v1178_v53 = vld [vmem:[%s2922_s9 + $0x3a8] sm:$0xff]  ;;  %v1179_v54 = vld [vmem:[%s2922_s9 + $0x3b0] sm:$0xff] }
 0x111   : > { %1434 = vst [vmem:[%s2163_s29 + $0x928] sm:$0xff] %v1177_v52  ;;  %v1180_v55 = vld [vmem:[%s2922_s9 + $0x3b8] sm:$0xff]  ;;  %1435 = vst.msk [vmem:[%s2163_s29 + $0x930] sm:$0xff] %vm1318_vm0, %v1178_v53  ;;  %v1181_v56 = vld [vmem:[%s2922_s9 + $0x3c0] sm:$0xff] }
 0x112   : > { %1436 = vst [vmem:[%s2163_s29 + $0x950] sm:$0xff] %v1179_v54  ;;  %1437 = vst.msk [vmem:[%s2163_s29 + $0x958] sm:$0xff] %vm1318_vm0, %v1180_v55  ;;  %v1182_v57 = vld [vmem:[%s2922_s9 + $0x3c8] sm:$0xff]  ;;  %v1183_v58 = vld [vmem:[%s2922_s9 + $0x3d0] sm:$0xff] }
 0x113   : > { %1438 = vst [vmem:[%s2163_s29 + $0x978] sm:$0xff] %v1181_v56  ;;  %1439 = vst.msk [vmem:[%s2163_s29 + $0x980] sm:$0xff] %vm1318_vm0, %v1182_v57  ;;  %v1184_v59 = vld [vmem:[%s2922_s9 + $0x3d8] sm:$0xff]  ;;  %v1185_v60 = vld [vmem:[%s2922_s9 + $0x3e0] sm:$0xff] }
 0x114   : > { %1440 = vst [vmem:[%s2163_s29 + $0x9a0] sm:$0xff] %v1183_v58  ;;  %v1186_v61 = vld [vmem:[%s2922_s9 + $0x3e8] sm:$0xff]  ;;  %1441 = vst.msk [vmem:[%s2163_s29 + $0x9a8] sm:$0xff] %vm1318_vm0, %v1184_v59  ;;  %v1187_v62 = vld [vmem:[%s2922_s9 + $0x3f0] sm:$0xff] }
 0x115   : > { %1442 = vst [vmem:[%s2163_s29 + $0x9c8] sm:$0xff] %v1185_v60  ;;  %1443 = vst.msk [vmem:[%s2163_s29 + $0x9d0] sm:$0xff] %vm1318_vm0, %v1186_v61  ;;  %v1188_v63 = vld [vmem:[%s2922_s9 + $0x3f8] sm:$0xff]  ;;  %v1189_v0 = vld [vmem:[%s2922_s9 + $0x400] sm:$0xff] }
 0x116   : > { %1444 = vst [vmem:[%s2163_s29 + $0x9f0] sm:$0xff] %v1187_v62  ;;  %1445 = vst.msk [vmem:[%s2163_s29 + $0x9f8] sm:$0xff] %vm1318_vm0, %v1188_v63  ;;  %v1190_v1 = vld [vmem:[%s2922_s9 + $0x408] sm:$0xff]  ;;  %v1191_v2 = vld [vmem:[%s2922_s9 + $0x410] sm:$0xff] }
 0x117   : > { %1446 = vst [vmem:[%s2163_s29 + $0xa18] sm:$0xff] %v1189_v0  ;;  %v1192_v3 = vld [vmem:[%s2922_s9 + $0x418] sm:$0xff]  ;;  %1447 = vst.msk [vmem:[%s2163_s29 + $0xa20] sm:$0xff] %vm1318_vm0, %v1190_v1  ;;  %v1193_v4 = vld [vmem:[%s2922_s9 + $0x420] sm:$0xff] }
 0x118   : > { %1448 = vst [vmem:[%s2163_s29 + $0xa40] sm:$0xff] %v1191_v2  ;;  %1449 = vst.msk [vmem:[%s2163_s29 + $0xa48] sm:$0xff] %vm1318_vm0, %v1192_v3  ;;  %v1194_v5 = vld [vmem:[%s2922_s9 + $0x428] sm:$0xff]  ;;  %v1195_v6 = vld [vmem:[%s2922_s9 + $0x430] sm:$0xff] }
 0x119   : > { %1450 = vst [vmem:[%s2163_s29 + $0xa68] sm:$0xff] %v1193_v4  ;;  %1451 = vst.msk [vmem:[%s2163_s29 + $0xa70] sm:$0xff] %vm1318_vm0, %v1194_v5  ;;  %v1196_v7 = vld [vmem:[%s2922_s9 + $0x438] sm:$0xff]  ;;  %v1197_v8 = vld [vmem:[%s2922_s9 + $0x440] sm:$0xff] }
 0x11a   : > { %1452 = vst [vmem:[%s2163_s29 + $0xa90] sm:$0xff] %v1195_v6  ;;  %v1198_v9 = vld [vmem:[%s2922_s9 + $0x448] sm:$0xff]  ;;  %1453 = vst.msk [vmem:[%s2163_s29 + $0xa98] sm:$0xff] %vm1318_vm0, %v1196_v7  ;;  %v1199_v10 = vld [vmem:[%s2922_s9 + $0x450] sm:$0xff] }
 0x11b   : > { %1454 = vst [vmem:[%s2163_s29 + $0xab8] sm:$0xff] %v1197_v8  ;;  %1455 = vst.msk [vmem:[%s2163_s29 + $0xac0] sm:$0xff] %vm1318_vm0, %v1198_v9  ;;  %v1200_v11 = vld [vmem:[%s2922_s9 + $0x458] sm:$0xff]  ;;  %v1201_v12 = vld [vmem:[%s2922_s9 + $0x460] sm:$0xff] }
 0x11c   : > { %1456 = vst [vmem:[%s2163_s29 + $0xae0] sm:$0xff] %v1199_v10  ;;  %1457 = vst.msk [vmem:[%s2163_s29 + $0xae8] sm:$0xff] %vm1318_vm0, %v1200_v11  ;;  %v1202_v13 = vld [vmem:[%s2922_s9 + $0x468] sm:$0xff]  ;;  %v1203_v14 = vld [vmem:[%s2922_s9 + $0x470] sm:$0xff] }
 0x11d   : > { %1458 = vst [vmem:[%s2163_s29 + $0xb08] sm:$0xff] %v1201_v12  ;;  %v1204_v15 = vld [vmem:[%s2922_s9 + $0x478] sm:$0xff]  ;;  %1459 = vst.msk [vmem:[%s2163_s29 + $0xb10] sm:$0xff] %vm1318_vm0, %v1202_v13  ;;  %v1205_v16 = vld [vmem:[%s2922_s9 + $0x480] sm:$0xff] }
 0x11e   : > { %1460 = vst [vmem:[%s2163_s29 + $0xb30] sm:$0xff] %v1203_v14  ;;  %1461 = vst.msk [vmem:[%s2163_s29 + $0xb38] sm:$0xff] %vm1318_vm0, %v1204_v15  ;;  %v1206_v17 = vld [vmem:[%s2922_s9 + $0x488] sm:$0xff]  ;;  %v1207_v18 = vld [vmem:[%s2922_s9 + $0x490] sm:$0xff] }
 0x11f   : > { %1462 = vst [vmem:[%s2163_s29 + $0xb58] sm:$0xff] %v1205_v16  ;;  %1463 = vst.msk [vmem:[%s2163_s29 + $0xb60] sm:$0xff] %vm1318_vm0, %v1206_v17  ;;  %v1208_v19 = vld [vmem:[%s2922_s9 + $0x498] sm:$0xff]  ;;  %v1209_v20 = vld [vmem:[%s2922_s9 + $0x4a0] sm:$0xff] }
 0x120   : > { %1464 = vst [vmem:[%s2163_s29 + $0xb80] sm:$0xff] %v1207_v18  ;;  %v1210_v21 = vld [vmem:[%s2922_s9 + $0x4a8] sm:$0xff]  ;;  %1465 = vst.msk [vmem:[%s2163_s29 + $0xb88] sm:$0xff] %vm1318_vm0, %v1208_v19  ;;  %v1211_v22 = vld [vmem:[%s2922_s9 + $0x4b0] sm:$0xff] }
 0x121   : > { %1466 = vst [vmem:[%s2163_s29 + $0xba8] sm:$0xff] %v1209_v20  ;;  %1467 = vst.msk [vmem:[%s2163_s29 + $0xbb0] sm:$0xff] %vm1318_vm0, %v1210_v21  ;;  %v1212_v23 = vld [vmem:[%s2922_s9 + $0x4b8] sm:$0xff]  ;;  %v1213_v24 = vld [vmem:[%s2922_s9 + $0x4c0] sm:$0xff] }
 0x122   : > { %1468 = vst [vmem:[%s2163_s29 + $0xbd0] sm:$0xff] %v1211_v22  ;;  %1469 = vst.msk [vmem:[%s2163_s29 + $0xbd8] sm:$0xff] %vm1318_vm0, %v1212_v23  ;;  %v1214_v25 = vld [vmem:[%s2922_s9 + $0x4c8] sm:$0xff]  ;;  %v1215_v26 = vld [vmem:[%s2922_s9 + $0x4d0] sm:$0xff] }
 0x123   : > { %1470 = vst [vmem:[%s2163_s29 + $0xbf8] sm:$0xff] %v1213_v24  ;;  %v1216_v27 = vld [vmem:[%s2922_s9 + $0x4d8] sm:$0xff]  ;;  %1471 = vst.msk [vmem:[%s2163_s29 + $0xc00] sm:$0xff] %vm1318_vm0, %v1214_v25  ;;  %v1217_v28 = vld [vmem:[%s2922_s9 + $0x4e0] sm:$0xff] }
 0x124   : > { %1472 = vst [vmem:[%s2163_s29 + $0xc20] sm:$0xff] %v1215_v26  ;;  %1473 = vst.msk [vmem:[%s2163_s29 + $0xc28] sm:$0xff] %vm1318_vm0, %v1216_v27  ;;  %v1218_v29 = vld [vmem:[%s2922_s9 + $0x4e8] sm:$0xff]  ;;  %v1219_v30 = vld [vmem:[%s2922_s9 + $0x4f0] sm:$0xff] }
 0x125   : > { %1474 = vst [vmem:[%s2163_s29 + $0xc48] sm:$0xff] %v1217_v28  ;;  %1475 = vst.msk [vmem:[%s2163_s29 + $0xc50] sm:$0xff] %vm1318_vm0, %v1218_v29  ;;  %v1220_v31 = vld [vmem:[%s2922_s9 + $0x4f8] sm:$0xff]  ;;  %v1221_v32 = vld [vmem:[%s2922_s9 + $0x500] sm:$0xff] }
 0x126   : > { %1476 = vst [vmem:[%s2163_s29 + $0xc70] sm:$0xff] %v1219_v30  ;;  %v1222_v33 = vld [vmem:[%s2922_s9 + $0x508] sm:$0xff]  ;;  %1477 = vst.msk [vmem:[%s2163_s29 + $0xc78] sm:$0xff] %vm1318_vm0, %v1220_v31  ;;  %v1223_v34 = vld [vmem:[%s2922_s9 + $0x510] sm:$0xff] }
 0x127   : > { %1478 = vst [vmem:[%s2163_s29 + $0xc98] sm:$0xff] %v1221_v32  ;;  %1479 = vst.msk [vmem:[%s2163_s29 + $0xca0] sm:$0xff] %vm1318_vm0, %v1222_v33  ;;  %v1224_v35 = vld [vmem:[%s2922_s9 + $0x518] sm:$0xff]  ;;  %v1225_v36 = vld [vmem:[%s2922_s9 + $0x520] sm:$0xff] }
 0x128   : > { %1480 = vst [vmem:[%s2163_s29 + $0xcc0] sm:$0xff] %v1223_v34  ;;  %1481 = vst.msk [vmem:[%s2163_s29 + $0xcc8] sm:$0xff] %vm1318_vm0, %v1224_v35  ;;  %v1226_v37 = vld [vmem:[%s2922_s9 + $0x528] sm:$0xff]  ;;  %v1227_v38 = vld [vmem:[%s2922_s9 + $0x530] sm:$0xff] }
 0x129   : > { %1482 = vst [vmem:[%s2163_s29 + $0xce8] sm:$0xff] %v1225_v36  ;;  %v1228_v39 = vld [vmem:[%s2922_s9 + $0x538] sm:$0xff]  ;;  %1483 = vst.msk [vmem:[%s2163_s29 + $0xcf0] sm:$0xff] %vm1318_vm0, %v1226_v37  ;;  %v1229_v40 = vld [vmem:[%s2922_s9 + $0x540] sm:$0xff] }
 0x12a   : > { %1484 = vst [vmem:[%s2163_s29 + $0xd10] sm:$0xff] %v1227_v38  ;;  %1485 = vst.msk [vmem:[%s2163_s29 + $0xd18] sm:$0xff] %vm1318_vm0, %v1228_v39  ;;  %v1230_v41 = vld [vmem:[%s2922_s9 + $0x548] sm:$0xff]  ;;  %v1231_v42 = vld [vmem:[%s2922_s9 + $0x550] sm:$0xff] }
 0x12b   : > { %1486 = vst [vmem:[%s2163_s29 + $0xd38] sm:$0xff] %v1229_v40  ;;  %1487 = vst.msk [vmem:[%s2163_s29 + $0xd40] sm:$0xff] %vm1318_vm0, %v1230_v41  ;;  %v1232_v43 = vld [vmem:[%s2922_s9 + $0x558] sm:$0xff]  ;;  %v1233_v44 = vld [vmem:[%s2922_s9 + $0x560] sm:$0xff] }
 0x12c   : > { %1488 = vst [vmem:[%s2163_s29 + $0xd60] sm:$0xff] %v1231_v42  ;;  %v1234_v45 = vld [vmem:[%s2922_s9 + $0x568] sm:$0xff]  ;;  %1489 = vst.msk [vmem:[%s2163_s29 + $0xd68] sm:$0xff] %vm1318_vm0, %v1232_v43  ;;  %v1235_v46 = vld [vmem:[%s2922_s9 + $0x570] sm:$0xff] }
 0x12d   : > { %1490 = vst [vmem:[%s2163_s29 + $0xd88] sm:$0xff] %v1233_v44  ;;  %1491 = vst.msk [vmem:[%s2163_s29 + $0xd90] sm:$0xff] %vm1318_vm0, %v1234_v45  ;;  %v1236_v47 = vld [vmem:[%s2922_s9 + $0x578] sm:$0xff]  ;;  %v1237_v48 = vld [vmem:[%s2922_s9 + $0x580] sm:$0xff] }
 0x12e   : > { %1492 = vst [vmem:[%s2163_s29 + $0xdb0] sm:$0xff] %v1235_v46  ;;  %1493 = vst.msk [vmem:[%s2163_s29 + $0xdb8] sm:$0xff] %vm1318_vm0, %v1236_v47  ;;  %v1238_v49 = vld [vmem:[%s2922_s9 + $0x588] sm:$0xff]  ;;  %v1239_v50 = vld [vmem:[%s2922_s9 + $0x590] sm:$0xff] }
 0x12f   : > { %1494 = vst [vmem:[%s2163_s29 + $0xdd8] sm:$0xff] %v1237_v48  ;;  %v1240_v51 = vld [vmem:[%s2922_s9 + $0x598] sm:$0xff]  ;;  %1495 = vst.msk [vmem:[%s2163_s29 + $0xde0] sm:$0xff] %vm1318_vm0, %v1238_v49  ;;  %v1241_v52 = vld [vmem:[%s2922_s9 + $0x5a0] sm:$0xff] }
 0x130   : > { %1496 = vst [vmem:[%s2163_s29 + $0xe00] sm:$0xff] %v1239_v50  ;;  %1497 = vst.msk [vmem:[%s2163_s29 + $0xe08] sm:$0xff] %vm1318_vm0, %v1240_v51  ;;  %v1242_v53 = vld [vmem:[%s2922_s9 + $0x5a8] sm:$0xff]  ;;  %v1243_v54 = vld [vmem:[%s2922_s9 + $0x5b0] sm:$0xff] }
 0x131   : > { %1498 = vst [vmem:[%s2163_s29 + $0xe28] sm:$0xff] %v1241_v52  ;;  %1499 = vst.msk [vmem:[%s2163_s29 + $0xe30] sm:$0xff] %vm1318_vm0, %v1242_v53  ;;  %v1244_v55 = vld [vmem:[%s2922_s9 + $0x5b8] sm:$0xff]  ;;  %v1245_v56 = vld [vmem:[%s2922_s9 + $0x5c0] sm:$0xff] }
 0x132   : > { %1500 = vst [vmem:[%s2163_s29 + $0xe50] sm:$0xff] %v1243_v54  ;;  %v1246_v57 = vld [vmem:[%s2922_s9 + $0x5c8] sm:$0xff]  ;;  %1501 = vst.msk [vmem:[%s2163_s29 + $0xe58] sm:$0xff] %vm1318_vm0, %v1244_v55  ;;  %v1247_v58 = vld [vmem:[%s2922_s9 + $0x5d0] sm:$0xff] }
 0x133   : > { %1502 = vst [vmem:[%s2163_s29 + $0xe78] sm:$0xff] %v1245_v56  ;;  %1503 = vst.msk [vmem:[%s2163_s29 + $0xe80] sm:$0xff] %vm1318_vm0, %v1246_v57  ;;  %v1248_v59 = vld [vmem:[%s2922_s9 + $0x5d8] sm:$0xff]  ;;  %v1249_v60 = vld [vmem:[%s2922_s9 + $0x5e0] sm:$0xff] }
 0x134   : > { %1504 = vst [vmem:[%s2163_s29 + $0xea0] sm:$0xff] %v1247_v58  ;;  %1505 = vst.msk [vmem:[%s2163_s29 + $0xea8] sm:$0xff] %vm1318_vm0, %v1248_v59  ;;  %v1250_v61 = vld [vmem:[%s2922_s9 + $0x5e8] sm:$0xff]  ;;  %v1251_v62 = vld [vmem:[%s2922_s9 + $0x5f0] sm:$0xff] }
 0x135   : > { %1506 = vst [vmem:[%s2163_s29 + $0xec8] sm:$0xff] %v1249_v60  ;;  %v1252_v63 = vld [vmem:[%s2922_s9 + $0x5f8] sm:$0xff]  ;;  %1507 = vst.msk [vmem:[%s2163_s29 + $0xed0] sm:$0xff] %vm1318_vm0, %v1250_v61  ;;  %v1253_v0 = vld [vmem:[%s2922_s9 + $0x600] sm:$0xff] }
 0x136   : > { %1508 = vst [vmem:[%s2163_s29 + $0xef0] sm:$0xff] %v1251_v62  ;;  %1509 = vst.msk [vmem:[%s2163_s29 + $0xef8] sm:$0xff] %vm1318_vm0, %v1252_v63  ;;  %v1254_v1 = vld [vmem:[%s2922_s9 + $0x608] sm:$0xff]  ;;  %v1255_v2 = vld [vmem:[%s2922_s9 + $0x610] sm:$0xff] }
 0x137   : > { %1510 = vst [vmem:[%s2163_s29 + $0xf18] sm:$0xff] %v1253_v0  ;;  %1511 = vst.msk [vmem:[%s2163_s29 + $0xf20] sm:$0xff] %vm1318_vm0, %v1254_v1  ;;  %v1256_v3 = vld [vmem:[%s2922_s9 + $0x618] sm:$0xff]  ;;  %v1257_v4 = vld [vmem:[%s2922_s9 + $0x620] sm:$0xff] }
 0x138   : > { %1512 = vst [vmem:[%s2163_s29 + $0xf40] sm:$0xff] %v1255_v2  ;;  %v1258_v5 = vld [vmem:[%s2922_s9 + $0x628] sm:$0xff]  ;;  %1513 = vst.msk [vmem:[%s2163_s29 + $0xf48] sm:$0xff] %vm1318_vm0, %v1256_v3  ;;  %v1259_v6 = vld [vmem:[%s2922_s9 + $0x630] sm:$0xff] }
 0x139   : > { %1514 = vst [vmem:[%s2163_s29 + $0xf68] sm:$0xff] %v1257_v4  ;;  %1515 = vst.msk [vmem:[%s2163_s29 + $0xf70] sm:$0xff] %vm1318_vm0, %v1258_v5  ;;  %v1260_v7 = vld [vmem:[%s2922_s9 + $0x638] sm:$0xff]  ;;  %v1261_v8 = vld [vmem:[%s2922_s9 + $0x640] sm:$0xff] }
 0x13a   : > { %1516 = vst [vmem:[%s2163_s29 + $0xf90] sm:$0xff] %v1259_v6  ;;  %1517 = vst.msk [vmem:[%s2163_s29 + $0xf98] sm:$0xff] %vm1318_vm0, %v1260_v7  ;;  %v1262_v9 = vld [vmem:[%s2922_s9 + $0x648] sm:$0xff]  ;;  %v1263_v10 = vld [vmem:[%s2922_s9 + $0x650] sm:$0xff] }
 0x13b   : > { %1518 = vst [vmem:[%s2163_s29 + $0xfb8] sm:$0xff] %v1261_v8  ;;  %v1264_v11 = vld [vmem:[%s2922_s9 + $0x658] sm:$0xff]  ;;  %1519 = vst.msk [vmem:[%s2163_s29 + $0xfc0] sm:$0xff] %vm1318_vm0, %v1262_v9  ;;  %v1265_v12 = vld [vmem:[%s2922_s9 + $0x660] sm:$0xff] }
 0x13c   : > { %1520 = vst [vmem:[%s2163_s29 + $0xfe0] sm:$0xff] %v1263_v10  ;;  %1521 = vst.msk [vmem:[%s2163_s29 + $0xfe8] sm:$0xff] %vm1318_vm0, %v1264_v11  ;;  %v1266_v13 = vld [vmem:[%s2922_s9 + $0x668] sm:$0xff]  ;;  %v1267_v14 = vld [vmem:[%s2922_s9 + $0x670] sm:$0xff] }
 0x13d   : > { %1522 = vst [vmem:[%s2163_s29 + $0x1008] sm:$0xff] %v1265_v12  ;;  %1523 = vst.msk [vmem:[%s2163_s29 + $0x1010] sm:$0xff] %vm1318_vm0, %v1266_v13  ;;  %v1268_v15 = vld [vmem:[%s2922_s9 + $0x678] sm:$0xff]  ;;  %v1269_v16 = vld [vmem:[%s2922_s9 + $0x680] sm:$0xff] }
 0x13e   : > { %1524 = vst [vmem:[%s2163_s29 + $0x1030] sm:$0xff] %v1267_v14  ;;  %v1270_v17 = vld [vmem:[%s2922_s9 + $0x688] sm:$0xff]  ;;  %1525 = vst.msk [vmem:[%s2163_s29 + $0x1038] sm:$0xff] %vm1318_vm0, %v1268_v15  ;;  %v1271_v18 = vld [vmem:[%s2922_s9 + $0x690] sm:$0xff] }
 0x13f   : > { %1526 = vst [vmem:[%s2163_s29 + $0x1058] sm:$0xff] %v1269_v16  ;;  %1527 = vst.msk [vmem:[%s2163_s29 + $0x1060] sm:$0xff] %vm1318_vm0, %v1270_v17  ;;  %v1272_v19 = vld [vmem:[%s2922_s9 + $0x698] sm:$0xff]  ;;  %v1273_v20 = vld [vmem:[%s2922_s9 + $0x6a0] sm:$0xff] }
 0x140   : > { %1528 = vst [vmem:[%s2163_s29 + $0x1080] sm:$0xff] %v1271_v18  ;;  %1529 = vst.msk [vmem:[%s2163_s29 + $0x1088] sm:$0xff] %vm1318_vm0, %v1272_v19  ;;  %v1274_v21 = vld [vmem:[%s2922_s9 + $0x6a8] sm:$0xff]  ;;  %v1275_v22 = vld [vmem:[%s2922_s9 + $0x6b0] sm:$0xff] }
 0x141   : > { %1530 = vst [vmem:[%s2163_s29 + $0x10a8] sm:$0xff] %v1273_v20  ;;  %v1276_v23 = vld [vmem:[%s2922_s9 + $0x6b8] sm:$0xff]  ;;  %1531 = vst.msk [vmem:[%s2163_s29 + $0x10b0] sm:$0xff] %vm1318_vm0, %v1274_v21  ;;  %v1277_v24 = vld [vmem:[%s2922_s9 + $0x6c0] sm:$0xff] }
 0x142   : > { %1532 = vst [vmem:[%s2163_s29 + $0x10d0] sm:$0xff] %v1275_v22  ;;  %1533 = vst.msk [vmem:[%s2163_s29 + $0x10d8] sm:$0xff] %vm1318_vm0, %v1276_v23  ;;  %v1278_v25 = vld [vmem:[%s2922_s9 + $0x6c8] sm:$0xff]  ;;  %v1279_v26 = vld [vmem:[%s2922_s9 + $0x6d0] sm:$0xff] }
 0x143   : > { %1534 = vst [vmem:[%s2163_s29 + $0x10f8] sm:$0xff] %v1277_v24  ;;  %1535 = vst.msk [vmem:[%s2163_s29 + $0x1100] sm:$0xff] %vm1318_vm0, %v1278_v25  ;;  %v1280_v27 = vld [vmem:[%s2922_s9 + $0x6d8] sm:$0xff]  ;;  %v1281_v28 = vld [vmem:[%s2922_s9 + $0x6e0] sm:$0xff] }
 0x144   : > { %1536 = vst [vmem:[%s2163_s29 + $0x1120] sm:$0xff] %v1279_v26  ;;  %v1282_v29 = vld [vmem:[%s2922_s9 + $0x6e8] sm:$0xff]  ;;  %1537 = vst.msk [vmem:[%s2163_s29 + $0x1128] sm:$0xff] %vm1318_vm0, %v1280_v27  ;;  %v1283_v30 = vld [vmem:[%s2922_s9 + $0x6f0] sm:$0xff] }
 0x145   : > { %1538 = vst [vmem:[%s2163_s29 + $0x1148] sm:$0xff] %v1281_v28  ;;  %1539 = vst.msk [vmem:[%s2163_s29 + $0x1150] sm:$0xff] %vm1318_vm0, %v1282_v29  ;;  %v1284_v31 = vld [vmem:[%s2922_s9 + $0x6f8] sm:$0xff]  ;;  %v1285_v32 = vld [vmem:[%s2922_s9 + $0x700] sm:$0xff] }
 0x146   : > { %1540 = vst [vmem:[%s2163_s29 + $0x1170] sm:$0xff] %v1283_v30  ;;  %1541 = vst.msk [vmem:[%s2163_s29 + $0x1178] sm:$0xff] %vm1318_vm0, %v1284_v31  ;;  %v1286_v33 = vld [vmem:[%s2922_s9 + $0x708] sm:$0xff]  ;;  %v1287_v34 = vld [vmem:[%s2922_s9 + $0x710] sm:$0xff] }
 0x147   : > { %1542 = vst [vmem:[%s2163_s29 + $0x1198] sm:$0xff] %v1285_v32  ;;  %v1288_v35 = vld [vmem:[%s2922_s9 + $0x718] sm:$0xff]  ;;  %1543 = vst.msk [vmem:[%s2163_s29 + $0x11a0] sm:$0xff] %vm1318_vm0, %v1286_v33  ;;  %v1289_v36 = vld [vmem:[%s2922_s9 + $0x720] sm:$0xff] }
 0x148   : > { %1544 = vst [vmem:[%s2163_s29 + $0x11c0] sm:$0xff] %v1287_v34  ;;  %1545 = vst.msk [vmem:[%s2163_s29 + $0x11c8] sm:$0xff] %vm1318_vm0, %v1288_v35  ;;  %v1290_v37 = vld [vmem:[%s2922_s9 + $0x728] sm:$0xff]  ;;  %v1291_v38 = vld [vmem:[%s2922_s9 + $0x730] sm:$0xff] }
 0x149   : > { %1546 = vst [vmem:[%s2163_s29 + $0x11e8] sm:$0xff] %v1289_v36  ;;  %1547 = vst.msk [vmem:[%s2163_s29 + $0x11f0] sm:$0xff] %vm1318_vm0, %v1290_v37  ;;  %v1292_v39 = vld [vmem:[%s2922_s9 + $0x738] sm:$0xff]  ;;  %v1293_v40 = vld [vmem:[%s2922_s9 + $0x740] sm:$0xff] }
 0x14a   : > { %1548 = vst [vmem:[%s2163_s29 + $0x1210] sm:$0xff] %v1291_v38  ;;  %v1294_v41 = vld [vmem:[%s2922_s9 + $0x748] sm:$0xff]  ;;  %1549 = vst.msk [vmem:[%s2163_s29 + $0x1218] sm:$0xff] %vm1318_vm0, %v1292_v39  ;;  %v1295_v42 = vld [vmem:[%s2922_s9 + $0x750] sm:$0xff] }
 0x14b   : > { %1550 = vst [vmem:[%s2163_s29 + $0x1238] sm:$0xff] %v1293_v40  ;;  %1551 = vst.msk [vmem:[%s2163_s29 + $0x1240] sm:$0xff] %vm1318_vm0, %v1294_v41  ;;  %v1296_v43 = vld [vmem:[%s2922_s9 + $0x758] sm:$0xff]  ;;  %v1297_v44 = vld [vmem:[%s2922_s9 + $0x760] sm:$0xff] }
 0x14c   : > { %1552 = vst [vmem:[%s2163_s29 + $0x1260] sm:$0xff] %v1295_v42  ;;  %1553 = vst.msk [vmem:[%s2163_s29 + $0x1268] sm:$0xff] %vm1318_vm0, %v1296_v43  ;;  %v1298_v45 = vld [vmem:[%s2922_s9 + $0x768] sm:$0xff]  ;;  %v1299_v46 = vld [vmem:[%s2922_s9 + $0x770] sm:$0xff] }
 0x14d   : > { %1554 = vst [vmem:[%s2163_s29 + $0x1288] sm:$0xff] %v1297_v44  ;;  %v1300_v47 = vld [vmem:[%s2922_s9 + $0x778] sm:$0xff]  ;;  %1555 = vst.msk [vmem:[%s2163_s29 + $0x1290] sm:$0xff] %vm1318_vm0, %v1298_v45  ;;  %v1301_v48 = vld [vmem:[%s2922_s9 + $0x780] sm:$0xff] }
 0x14e   : > { %1556 = vst [vmem:[%s2163_s29 + $0x12b0] sm:$0xff] %v1299_v46  ;;  %1557 = vst.msk [vmem:[%s2163_s29 + $0x12b8] sm:$0xff] %vm1318_vm0, %v1300_v47  ;;  %v1302_v49 = vld [vmem:[%s2922_s9 + $0x788] sm:$0xff]  ;;  %v1303_v50 = vld [vmem:[%s2922_s9 + $0x790] sm:$0xff] }
 0x14f   : > { %1558 = vst [vmem:[%s2163_s29 + $0x12d8] sm:$0xff] %v1301_v48  ;;  %1559 = vst.msk [vmem:[%s2163_s29 + $0x12e0] sm:$0xff] %vm1318_vm0, %v1302_v49  ;;  %v1304_v51 = vld [vmem:[%s2922_s9 + $0x798] sm:$0xff]  ;;  %v1305_v52 = vld [vmem:[%s2922_s9 + $0x7a0] sm:$0xff] }
 0x150   : > { %1560 = vst [vmem:[%s2163_s29 + $0x1300] sm:$0xff] %v1303_v50  ;;  %v1306_v53 = vld [vmem:[%s2922_s9 + $0x7a8] sm:$0xff]  ;;  %1561 = vst.msk [vmem:[%s2163_s29 + $0x1308] sm:$0xff] %vm1318_vm0, %v1304_v51  ;;  %v1307_v54 = vld [vmem:[%s2922_s9 + $0x7b0] sm:$0xff]  ;;  %1580 = sbr.rel (!%p2143_p4) target bundleno = 429 (0x1ad), region = 36 }
 0x151   : > { %1562 = vst [vmem:[%s2163_s29 + $0x1328] sm:$0xff] %v1305_v52  ;;  %1563 = vst.msk [vmem:[%s2163_s29 + $0x1330] sm:$0xff] %vm1318_vm0, %v1306_v53  ;;  %v1308_v55 = vld [vmem:[%s2922_s9 + $0x7b8] sm:$0xff]  ;;  %v1309_v56 = vld [vmem:[%s2922_s9 + $0x7c0] sm:$0xff] }
 0x152   : > { %1564 = vst [vmem:[%s2163_s29 + $0x1350] sm:$0xff] %v1307_v54  ;;  %1565 = vst.msk [vmem:[%s2163_s29 + $0x1358] sm:$0xff] %vm1318_vm0, %v1308_v55  ;;  %v1310_v57 = vld [vmem:[%s2922_s9 + $0x7c8] sm:$0xff]  ;;  %v1311_v58 = vld [vmem:[%s2922_s9 + $0x7d0] sm:$0xff] }
 0x153   : > { %1566 = vst [vmem:[%s2163_s29 + $0x1378] sm:$0xff] %v1309_v56  ;;  %v1312_v59 = vld [vmem:[%s2922_s9 + $0x7d8] sm:$0xff]  ;;  %1567 = vst.msk [vmem:[%s2163_s29 + $0x1380] sm:$0xff] %vm1318_vm0, %v1310_v57  ;;  %v1313_v60 = vld [vmem:[%s2922_s9 + $0x7e0] sm:$0xff] }
 0x154   : > { %1568 = vst [vmem:[%s2163_s29 + $0x13a0] sm:$0xff] %v1311_v58  ;;  %1569 = vst.msk [vmem:[%s2163_s29 + $0x13a8] sm:$0xff] %vm1318_vm0, %v1312_v59  ;;  %v1314_v61 = vld [vmem:[%s2922_s9 + $0x7e8] sm:$0xff]  ;;  %v1315_v62 = vld [vmem:[%s2922_s9 + $0x7f0] sm:$0xff] }
 0x155   : > { %1570 = vst [vmem:[%s2163_s29 + $0x13c8] sm:$0xff] %v1313_v60  ;;  %1571 = vst.msk [vmem:[%s2163_s29 + $0x13d0] sm:$0xff] %vm1318_vm0, %v1314_v61  ;;  %v1316_v63 = vld [vmem:[%s2922_s9 + $0x7f8] sm:$0xff] }
 0x156   : > { %1572 = vst [vmem:[%s2163_s29 + $0x13f0] sm:$0xff] %v1315_v62  ;;  %1573 = vst.msk [vmem:[%s2163_s29 + $0x13f8] sm:$0xff] %vm1318_vm0, %v1316_v63 }
 0x157   : > { %s3833_s10 = smov (!%p1583_p8, %s1582_s10), 128 }
 0x158   : > { %s1905_s18 = smul.u32 640, %s3833_s10 }
 0x15a   : > { %p1909_p9 = scmp.eq.s32.totalorder %s1905_s18, 0 }
 0x15b   : > { %2009 = sdivrem.u32 (!%p1909_p9), %s3833_s10, 13 }
 0x15c   : > { %1593 = sbr.rel (%p1909_p9) target bundleno = 429 (0x1ad), region = 40 }
 0x164   : > { %s3598_s20 = spop.drf %2009 }
 0x165   : > { %p1910_p10 = scmp.le.s32.totalorder %s3598_s20, 0 }
 0x166   : > { %s3821_s15 = smov (!%p1910_p10), %s3592_s17  ;;  %s3822_s21 = smov (!%p1910_p10), %s2163_s29 }
 0x167   : > { %1835 = sbr.rel (%p1910_p10) target bundleno = 400 (0x190), region = 94  ;;  %s3607_s22 = smov (!%p1910_p10), 0  }
 0x168   : > { %s3609_s23 = smov (!%p1910_p10), 0  }
 0x16e LB: >> { %v1607_v0 = vld [vmem:[%s2075_s21] sm:$0xff]  ;;  %v1609_v1 = vld [vmem:[%s2075_s21 + $0x28] sm:$0xff]  ;;  %v1611_v2 = vld [vmem:[%s2075_s21 + $0x50] sm:$0xff]  ;;  %s1737_s24 = sadd.s32 1, %s2079_s22  ;;  %s1601_s23 = sadd.s32 1, %s2083_s23   ;;  %s2083_s23 = sphi %s3609_s23, %s1601_s23   ;;  %s2079_s22 = sphi %s3607_s22, %s3825_s22   ;;  %s2075_s21 = sphi %s3822_s21, %s3824_s21   ;;  %s2071_s15 = sphi %s3821_s15, %s3823_s15  }
 0x16f   : >> { %1608 = vst [vmem:[%s2071_s15] sm:$0xff] %v1607_v0  ;;  %1610 = vst [vmem:[%s2071_s15 + $0x28] sm:$0xff] %v1609_v1  ;;  %v1613_v3 = vld [vmem:[%s2075_s21 + $0x78] sm:$0xff]  ;;  %v1615_v4 = vld [vmem:[%s2075_s21 + $0xa0] sm:$0xff]  ;;  %p1738_p11 = scmp.ge.s32.totalorder %s1737_s24, %s3598_s20  ;;  %p1600_p12 = scmp.ge.s32.totalorder %s1601_s23, %s3598_s20 }
 0x170   : >> { %1612 = vst [vmem:[%s2071_s15 + $0x50] sm:$0xff] %v1611_v2  ;;  %v1617_v5 = vld [vmem:[%s2075_s21 + $0xc8] sm:$0xff]  ;;  %1614 = vst [vmem:[%s2071_s15 + $0x78] sm:$0xff] %v1613_v3  ;;  %v1619_v6 = vld [vmem:[%s2075_s21 + $0xf0] sm:$0xff] }
 0x171   : >> { %1616 = vst [vmem:[%s2071_s15 + $0xa0] sm:$0xff] %v1615_v4  ;;  %1618 = vst [vmem:[%s2071_s15 + $0xc8] sm:$0xff] %v1617_v5  ;;  %v1621_v7 = vld [vmem:[%s2075_s21 + $0x118] sm:$0xff]  ;;  %v1623_v8 = vld [vmem:[%s2075_s21 + $0x140] sm:$0xff]  ;;  %s3835_s24 = smov (%p1738_p11, %s1737_s24), 0 }
 0x172   : >> { %1620 = vst [vmem:[%s2071_s15 + $0xf0] sm:$0xff] %v1619_v6  ;;  %1622 = vst [vmem:[%s2071_s15 + $0x118] sm:$0xff] %v1621_v7  ;;  %v1625_v9 = vld [vmem:[%s2075_s21 + $0x168] sm:$0xff]  ;;  %v1627_v10 = vld [vmem:[%s2075_s21 + $0x190] sm:$0xff]  ;;  %s1740_s25 = smul.u32 520, %s3835_s24  ;;  %s3825_s22 = smov %s3835_s24 }
 0x173   : >> { %1624 = vst [vmem:[%s2071_s15 + $0x140] sm:$0xff] %v1623_v8  ;;  %v1629_v11 = vld [vmem:[%s2075_s21 + $0x1b8] sm:$0xff]  ;;  %1626 = vst [vmem:[%s2071_s15 + $0x168] sm:$0xff] %v1625_v9  ;;  %v1631_v12 = vld [vmem:[%s2075_s21 + $0x1e0] sm:$0xff] }
 0x174   : >> { %1628 = vst [vmem:[%s2071_s15 + $0x190] sm:$0xff] %v1627_v10  ;;  %1630 = vst [vmem:[%s2071_s15 + $0x1b8] sm:$0xff] %v1629_v11  ;;  %v1633_v13 = vld [vmem:[%s2075_s21 + $0x8] sm:$0xff]  ;;  %v1635_v14 = vld [vmem:[%s2075_s21 + $0x30] sm:$0xff]  ;;  %s3671_s26 = scalar_lea.vmem %s2163_s29, %s1740_s25 [#allocation2]   ;;  %s3674_s27 = scalar_lea.vmem %s3592_s17, %s1740_s25  }
 0x175   : >> { %1632 = vst [vmem:[%s2071_s15 + $0x1e0] sm:$0xff] %v1631_v12  ;;  %1634 = vst [vmem:[%s2071_s15 + $0x8] sm:$0xff] %v1633_v13  ;;  %v1637_v15 = vld [vmem:[%s2075_s21 + $0x58] sm:$0xff]  ;;  %v1639_v16 = vld [vmem:[%s2075_s21 + $0x80] sm:$0xff] }
 0x176   : >> { %1636 = vst [vmem:[%s2071_s15 + $0x30] sm:$0xff] %v1635_v14  ;;  %v1641_v17 = vld [vmem:[%s2075_s21 + $0xa8] sm:$0xff]  ;;  %1638 = vst [vmem:[%s2071_s15 + $0x58] sm:$0xff] %v1637_v15  ;;  %v1643_v18 = vld [vmem:[%s2075_s21 + $0xd0] sm:$0xff] }
 0x177   : >> { %1640 = vst [vmem:[%s2071_s15 + $0x80] sm:$0xff] %v1639_v16  ;;  %1642 = vst [vmem:[%s2071_s15 + $0xa8] sm:$0xff] %v1641_v17  ;;  %v1645_v19 = vld [vmem:[%s2075_s21 + $0xf8] sm:$0xff]  ;;  %v1647_v20 = vld [vmem:[%s2075_s21 + $0x120] sm:$0xff] }
 0x178   : >> { %1644 = vst [vmem:[%s2071_s15 + $0xd0] sm:$0xff] %v1643_v18  ;;  %1646 = vst [vmem:[%s2071_s15 + $0xf8] sm:$0xff] %v1645_v19  ;;  %v1649_v21 = vld [vmem:[%s2075_s21 + $0x148] sm:$0xff]  ;;  %v1651_v22 = vld [vmem:[%s2075_s21 + $0x170] sm:$0xff] }
 0x179   : >> { %1648 = vst [vmem:[%s2071_s15 + $0x120] sm:$0xff] %v1647_v20  ;;  %v1653_v23 = vld [vmem:[%s2075_s21 + $0x198] sm:$0xff]  ;;  %1650 = vst [vmem:[%s2071_s15 + $0x148] sm:$0xff] %v1649_v21  ;;  %v1655_v24 = vld [vmem:[%s2075_s21 + $0x1c0] sm:$0xff] }
 0x17a   : >> { %1652 = vst [vmem:[%s2071_s15 + $0x170] sm:$0xff] %v1651_v22  ;;  %1654 = vst [vmem:[%s2071_s15 + $0x198] sm:$0xff] %v1653_v23  ;;  %v1657_v25 = vld [vmem:[%s2075_s21 + $0x1e8] sm:$0xff]  ;;  %v1659_v26 = vld [vmem:[%s2075_s21 + $0x10] sm:$0xff] }
 0x17b   : >> { %1656 = vst [vmem:[%s2071_s15 + $0x1c0] sm:$0xff] %v1655_v24  ;;  %1658 = vst [vmem:[%s2071_s15 + $0x1e8] sm:$0xff] %v1657_v25  ;;  %v1661_v27 = vld [vmem:[%s2075_s21 + $0x38] sm:$0xff]  ;;  %v1663_v28 = vld [vmem:[%s2075_s21 + $0x60] sm:$0xff] }
 0x17c   : >> { %1660 = vst [vmem:[%s2071_s15 + $0x10] sm:$0xff] %v1659_v26  ;;  %v1665_v29 = vld [vmem:[%s2075_s21 + $0x88] sm:$0xff]  ;;  %1662 = vst [vmem:[%s2071_s15 + $0x38] sm:$0xff] %v1661_v27  ;;  %v1667_v30 = vld [vmem:[%s2075_s21 + $0xb0] sm:$0xff] }
 0x17d   : >> { %1664 = vst [vmem:[%s2071_s15 + $0x60] sm:$0xff] %v1663_v28  ;;  %1666 = vst [vmem:[%s2071_s15 + $0x88] sm:$0xff] %v1665_v29  ;;  %v1669_v31 = vld [vmem:[%s2075_s21 + $0xd8] sm:$0xff]  ;;  %v1671_v32 = vld [vmem:[%s2075_s21 + $0x100] sm:$0xff] }
 0x17e   : >> { %1668 = vst [vmem:[%s2071_s15 + $0xb0] sm:$0xff] %v1667_v30  ;;  %1670 = vst [vmem:[%s2071_s15 + $0xd8] sm:$0xff] %v1669_v31  ;;  %v1673_v33 = vld [vmem:[%s2075_s21 + $0x128] sm:$0xff]  ;;  %v1675_v34 = vld [vmem:[%s2075_s21 + $0x150] sm:$0xff] }
 0x17f   : >> { %1672 = vst [vmem:[%s2071_s15 + $0x100] sm:$0xff] %v1671_v32  ;;  %v1677_v35 = vld [vmem:[%s2075_s21 + $0x178] sm:$0xff]  ;;  %1674 = vst [vmem:[%s2071_s15 + $0x128] sm:$0xff] %v1673_v33  ;;  %v1679_v36 = vld [vmem:[%s2075_s21 + $0x1a0] sm:$0xff] }
 0x180   : >> { %1676 = vst [vmem:[%s2071_s15 + $0x150] sm:$0xff] %v1675_v34  ;;  %1678 = vst [vmem:[%s2071_s15 + $0x178] sm:$0xff] %v1677_v35  ;;  %v1681_v37 = vld [vmem:[%s2075_s21 + $0x1c8] sm:$0xff]  ;;  %v1683_v38 = vld [vmem:[%s2075_s21 + $0x1f0] sm:$0xff] }
 0x181   : >> { %1680 = vst [vmem:[%s2071_s15 + $0x1a0] sm:$0xff] %v1679_v36  ;;  %1682 = vst [vmem:[%s2071_s15 + $0x1c8] sm:$0xff] %v1681_v37  ;;  %v1685_v39 = vld [vmem:[%s2075_s21 + $0x18] sm:$0xff]  ;;  %v1687_v40 = vld [vmem:[%s2075_s21 + $0x40] sm:$0xff] }
 0x182   : >> { %1684 = vst [vmem:[%s2071_s15 + $0x1f0] sm:$0xff] %v1683_v38  ;;  %v1689_v41 = vld [vmem:[%s2075_s21 + $0x68] sm:$0xff]  ;;  %1686 = vst [vmem:[%s2071_s15 + $0x18] sm:$0xff] %v1685_v39  ;;  %v1691_v42 = vld [vmem:[%s2075_s21 + $0x90] sm:$0xff] }
 0x183   : >> { %1688 = vst [vmem:[%s2071_s15 + $0x40] sm:$0xff] %v1687_v40  ;;  %1690 = vst [vmem:[%s2071_s15 + $0x68] sm:$0xff] %v1689_v41  ;;  %v1693_v43 = vld [vmem:[%s2075_s21 + $0xb8] sm:$0xff]  ;;  %v1695_v44 = vld [vmem:[%s2075_s21 + $0xe0] sm:$0xff] }
 0x184   : >> { %1692 = vst [vmem:[%s2071_s15 + $0x90] sm:$0xff] %v1691_v42  ;;  %1694 = vst [vmem:[%s2071_s15 + $0xb8] sm:$0xff] %v1693_v43  ;;  %v1697_v45 = vld [vmem:[%s2075_s21 + $0x108] sm:$0xff]  ;;  %v1699_v46 = vld [vmem:[%s2075_s21 + $0x130] sm:$0xff] }
 0x185   : >> { %1696 = vst [vmem:[%s2071_s15 + $0xe0] sm:$0xff] %v1695_v44  ;;  %v1701_v47 = vld [vmem:[%s2075_s21 + $0x158] sm:$0xff]  ;;  %1698 = vst [vmem:[%s2071_s15 + $0x108] sm:$0xff] %v1697_v45  ;;  %v1703_v48 = vld [vmem:[%s2075_s21 + $0x180] sm:$0xff] }
 0x186   : >> { %1700 = vst [vmem:[%s2071_s15 + $0x130] sm:$0xff] %v1699_v46  ;;  %1702 = vst [vmem:[%s2071_s15 + $0x158] sm:$0xff] %v1701_v47  ;;  %v1705_v49 = vld [vmem:[%s2075_s21 + $0x1a8] sm:$0xff]  ;;  %v1707_v50 = vld [vmem:[%s2075_s21 + $0x1d0] sm:$0xff] }
 0x187   : >> { %1704 = vst [vmem:[%s2071_s15 + $0x180] sm:$0xff] %v1703_v48  ;;  %1706 = vst [vmem:[%s2071_s15 + $0x1a8] sm:$0xff] %v1705_v49  ;;  %v1709_v51 = vld [vmem:[%s2075_s21 + $0x1f8] sm:$0xff]  ;;  %v1711_v52 = vld [vmem:[%s2075_s21 + $0x20] sm:$0xff] }
 0x188   : >> { %1708 = vst [vmem:[%s2071_s15 + $0x1d0] sm:$0xff] %v1707_v50  ;;  %v1713_v53 = vld [vmem:[%s2075_s21 + $0x48] sm:$0xff]  ;;  %1710 = vst [vmem:[%s2071_s15 + $0x1f8] sm:$0xff] %v1709_v51  ;;  %v1715_v54 = vld [vmem:[%s2075_s21 + $0x70] sm:$0xff] }
 0x189   : >> { %1712 = vst [vmem:[%s2071_s15 + $0x20] sm:$0xff] %v1711_v52  ;;  %1714 = vst [vmem:[%s2071_s15 + $0x48] sm:$0xff] %v1713_v53  ;;  %v1717_v55 = vld [vmem:[%s2075_s21 + $0x98] sm:$0xff]  ;;  %v1719_v56 = vld [vmem:[%s2075_s21 + $0xc0] sm:$0xff]  ;;  %1603 = sbr.rel (!%p1600_p12) target bundleno = 366 (0x16e), region = 100 }
 0x18a   : >> { %1716 = vst [vmem:[%s2071_s15 + $0x70] sm:$0xff] %v1715_v54  ;;  %1718 = vst [vmem:[%s2071_s15 + $0x98] sm:$0xff] %v1717_v55  ;;  %v1721_v57 = vld [vmem:[%s2075_s21 + $0xe8] sm:$0xff]  ;;  %v1723_v58 = vld [vmem:[%s2075_s21 + $0x110] sm:$0xff] }
 0x18b   : >> { %1720 = vst [vmem:[%s2071_s15 + $0xc0] sm:$0xff] %v1719_v56  ;;  %v1725_v59 = vld [vmem:[%s2075_s21 + $0x138] sm:$0xff]  ;;  %1722 = vst [vmem:[%s2071_s15 + $0xe8] sm:$0xff] %v1721_v57  ;;  %v1727_v60 = vld [vmem:[%s2075_s21 + $0x160] sm:$0xff] }
 0x18c   : >> { %1724 = vst [vmem:[%s2071_s15 + $0x110] sm:$0xff] %v1723_v58  ;;  %1726 = vst [vmem:[%s2071_s15 + $0x138] sm:$0xff] %v1725_v59  ;;  %v1729_v61 = vld [vmem:[%s2075_s21 + $0x188] sm:$0xff]  ;;  %v1731_v62 = vld [vmem:[%s2075_s21 + $0x1b0] sm:$0xff] }
 0x18d   : >> { %1728 = vst [vmem:[%s2071_s15 + $0x160] sm:$0xff] %v1727_v60  ;;  %1730 = vst [vmem:[%s2071_s15 + $0x188] sm:$0xff] %v1729_v61  ;;  %v1733_v63 = vld [vmem:[%s2075_s21 + $0x1d8] sm:$0xff]  ;;  %v1735_v0 = vld [vmem:[%s2075_s21 + $0x200] sm:$0xff]  ;;  %s3824_s21 = smov %s3671_s26 }
 0x18e   : >> { %1732 = vst [vmem:[%s2071_s15 + $0x1b0] sm:$0xff] %v1731_v62  ;;  %1734 = vst [vmem:[%s2071_s15 + $0x1d8] sm:$0xff] %v1733_v63 }
 0x18f   : >> { %1736 = vst [vmem:[%s2071_s15 + $0x200] sm:$0xff] %v1735_v0  ;;  %s3823_s15 = smov %s3674_s27 }
 0x190 PF: > { %2011 = sdivrem.u32 %s3833_s10, 13 }
 0x191   : > { %s1911_s28 = smul.u32 520, %s3598_s20 }
 0x193   : > { %s3777_s30 = scalar_lea.vmem %s2163_s29, %s1911_s28 [#allocation2]   ;;  %s3780_s4 = scalar_lea.vmem %s3592_s17, %s1911_s28  }
 0x199   : > { %s3782_s5 = spop.drf %2011 }
 0x19a   : > { %p1913_p13 = scmp.le.s32.totalorder %s3782_s5, 0 }
 0x19b   : > { %s3826_s6 = smov (!%p1913_p13), %s3780_s4  ;;  %s3827_s7 = smov (!%p1913_p13), %s3777_s30 }
 0x19c   : > { %1849 = sbr.rel (%p1913_p13) target bundleno = 429 (0x1ad), region = 105  ;;  %s3791_s8 = smov (!%p1913_p13), 0  }
 0x19d   : > { %s2097_s9 = smov (!%p1913_p13), 0  }
 0x1a3 LB: >> { %v1760_v1 = vld [vmem:[%s2091_s7] sm:$0xff]  ;;  %v1762_v2 = vld [vmem:[%s2091_s7 + $0x8] sm:$0xff]  ;;  %v1764_v3 = vld [vmem:[%s2091_s7 + $0x10] sm:$0xff]  ;;  %s1770_s29 = sadd.s32 1, %s2095_s8  ;;  %s1754_s9 = sadd.s32 1, %s2099_s9   ;;  %s2099_s9 = sphi %s2097_s9, %s1754_s9   ;;  %s2095_s8 = sphi %s3791_s8, %s3828_s8   ;;  %s2091_s7 = sphi %s3827_s7, %s1775_s7   ;;  %s2087_s6 = sphi %s3826_s6, %s1776_s6  }
 0x1a4   : >> { %1761 = vst [vmem:[%s2087_s6] sm:$0xff] %v1760_v1  ;;  %1763 = vst [vmem:[%s2087_s6 + $0x8] sm:$0xff] %v1762_v2  ;;  %v1766_v4 = vld [vmem:[%s2091_s7 + $0x18] sm:$0xff]  ;;  %v1768_v5 = vld [vmem:[%s2091_s7 + $0x20] sm:$0xff]  ;;  %p1771_p0 = scmp.ge.s32.totalorder %s1770_s29, %s3782_s5  ;;  %p1753_p1 = scmp.ge.s32.totalorder %s1754_s9, %s3782_s5 }
 0x1a5   : >> { %1765 = vst [vmem:[%s2087_s6 + $0x10] sm:$0xff] %v1764_v3  ;;  %1767 = vst [vmem:[%s2087_s6 + $0x18] sm:$0xff] %v1766_v4 }
 0x1a6   : >> { %1769 = vst [vmem:[%s2087_s6 + $0x20] sm:$0xff] %v1768_v5  ;;  %s3837_s29 = smov (%p1771_p0, %s1770_s29), 0  ;;  %1756 = sbr.rel (!%p1753_p1) target bundleno = 419 (0x1a3), region = 111 }
 0x1a7   : >> { %s1773_s10 = smul.u32 40, %s3837_s29  ;;  %s3828_s8 = smov %s3837_s29 }
 0x1a9   : >> { %s1775_s7 = scalar_lea.vmem %s3777_s30, %s1773_s10 [#allocation2]   ;;  %s1776_s6 = scalar_lea.vmem %s3780_s4, %s1773_s10  }
 0x1ad PF: > { %p10_p2 = scmp.ge.s32.totalorder %s2134_s16, 4   ;;  %s3829_s12 = smov %s2063_s13 }
 0x1ae   : > { %s3830_s13 = smov %s2141_s19  ;;  %s3831_s14 = smov %s2134_s16 }
 0x1af   :  { %12 = sbr.rel (!%p10_p2) target bundleno = 2 (0x2), region = 122 }

</bundles_post_ra>
